<compile_context>
chip_gen: v7x
topology: tpu7x:2x2x1
jax: 0.10.0
libtpu: 0.0.40
codegen_flags: <defaults>
</compile_context>

<pallas_src>
import jax
import jax.numpy as jnp
from jax.experimental import pallas as pl
from jax.experimental.pallas import tpu as pltpu


def simple_pointnet_kernel(p_ref,
                           wpos_ref, bpos_ref,
                           w0_ref, b0_ref,
                           w1a_ref, w1b_ref, b1_ref,
                           w2a_ref, w2b_ref, b2_ref,
                           w3a_ref, w3b_ref, b3_ref,
                           wc_ref, bc_ref,
                           out_ref):
    bb, T, D = p_ref.shape
    H = w0_ref.shape[1]
    N = bb * T
    cd = w0_ref.dtype            # matmul compute dtype (f32 or bf16)

    # ---- fc_pos: (N, D) @ (D, 2H) with D ~ 3.  A matmul would use only D of the MXU's
    # 128/256 contraction lanes, so do it as D VPU FMAs instead.  All f32.
    p2 = p_ref[...].reshape(N, D)
    if D <= 8:
        net = p2[:, 0:1] * wpos_ref[0:1, :]
        for d in range(1, D):
            net = net + p2[:, d:d + 1] * wpos_ref[d:d + 1, :]
        net = net + bpos_ref[...]                                   # (N, 2H) f32
    else:
        net = (jnp.dot(p2, wpos_ref[...], preferred_element_type=jnp.float32)
               + bpos_ref[...])

    # ---- fc_0
    a = jnp.maximum(net, 0.0)
    net = (jnp.dot(a.astype(cd), w0_ref[...], preferred_element_type=jnp.float32)
           + b0_ref[...])                                           # (N, H) f32
    net = net.reshape(bb, T, H)

    # ---- fc_1 / fc_2 / fc_3: relu -> [net | maxpool_T(net)] -> linear, fused.
    def pooled_layer(net, wt_ref, wb_ref, b_ref):
        a = jnp.maximum(net, 0.0)                                   # (bb, T, H) f32
        ap = jnp.max(a, axis=1)                                     # (bb, H) == relu(pool(net))
        y = jnp.dot(a.reshape(N, H).astype(cd), wt_ref[...],
                    preferred_element_type=jnp.float32)             # (N, H)
        yp = (jnp.dot(ap.astype(cd), wb_ref[...],
                      preferred_element_type=jnp.float32)
              + b_ref[...])                                         # (bb, H)
        return y.reshape(bb, T, H) + yp[:, None, :]                 # broadcast over T

    net = pooled_layer(net, w1a_ref, w1b_ref, b1_ref)
    net = pooled_layer(net, w2a_ref, w2b_ref, b2_ref)
    net = pooled_layer(net, w3a_ref, w3b_ref, b3_ref)

    # ---- global max-pool over points, then fc_c
    a = jnp.maximum(net, 0.0)
    ap = jnp.max(a, axis=1)                                         # (bb, H)
    c = (jnp.dot(ap.astype(cd), wc_ref[...], preferred_element_type=jnp.float32)
         + bc_ref[...])                                             # (bb, c_dim)
    out_ref[...] = c.astype(out_ref.dtype)


def simple_pointnet_pallas(p, params, *, block_b=8, compute_dtype=jnp.float32):
    B, T, D = p.shape
    wpos, bpos, w0, b0, w1, b1, w2, b2, w3, b3, wc, bc = params
    H = w0.shape[1]
    c_dim = wc.shape[1]

    # Largest divisor of B not exceeding block_b -> equal, full batch blocks.
    bb = max(d for d in range(1, min(block_b, B) + 1) if B % d == 0)
    grid = (B // bb,)

    cd = compute_dtype
    f32 = jnp.float32
    # Pre-split concat weights (guaranteed zero-copy in-kernel) and cast matmul weights to
    # the compute dtype; biases and fc_pos stay f32 (VPU path / f32 adds).
    weights = (wpos.astype(f32), bpos.astype(f32),
               w0.astype(cd), b0.astype(f32),
               w1[:H].astype(cd), w1[H:].astype(cd), b1.astype(f32),
               w2[:H].astype(cd), w2[H:].astype(cd), b2.astype(f32),
               w3[:H].astype(cd), w3[H:].astype(cd), b3.astype(f32),
               wc.astype(cd), bc.astype(f32))

    def const_spec(arr):
        return pl.BlockSpec(arr.shape, lambda b, _nd=arr.ndim: (0,) * _nd)

    return pl.pallas_call(
        simple_pointnet_kernel,
        out_shape=jax.ShapeDtypeStruct((B, c_dim), jnp.float32),
        grid_spec=pltpu.PrefetchScalarGridSpec(
            num_scalar_prefetch=0,
            grid=grid,
            in_specs=[pl.BlockSpec((bb, T, D), lambda b: (b, 0, 0))]
                     + [const_spec(w) for w in weights],
            out_specs=pl.BlockSpec((bb, c_dim), lambda b: (b, 0)),
        ),
        compiler_params=pltpu.CompilerParams(
            dimension_semantics=("parallel",),    # independent batch blocks (v7x: 2 TCs)
            vmem_limit_bytes=32 * 1024 * 1024,    # explicit budget, safe on v7x's 64 MiB
        ),
    )(p, *weights)


def simple_pointnet_ref(p, params):
    # Pure-JAX reference mirroring the PyTorch forward exactly (f32).
    wpos, bpos, w0, b0, w1, b1, w2, b2, w3, b3, wc, bc = params
    relu = lambda x: jnp.maximum(x, 0.0)
    net = p @ wpos + bpos
    net = relu(net) @ w0 + b0
    for w, b in ((w1, b1), (w2, b2), (w3, b3)):
        pooled = jnp.broadcast_to(jnp.max(net, axis=1, keepdims=True), net.shape)
        net = relu(jnp.concatenate([net, pooled], axis=2)) @ w + b
    net = jnp.max(net, axis=1)
    return relu(net) @ wc + bc


def init_params(key, dim, hidden_dim, c_dim):
    """Deterministic synthetic init (shapes match the PyTorch module's Linears)."""
    def linear(k, fan_in, fan_out):
        kw, kb = jax.random.split(k)
        scale = 1.0 / jnp.sqrt(jnp.float32(fan_in))
        w = jax.random.normal(kw, (fan_in, fan_out), jnp.float32) * scale
        b = jax.random.normal(kb, (1, fan_out), jnp.float32) * scale
        return w, b

    keys = jax.random.split(key, 6)
    wpos, bpos = linear(keys[0], dim, 2 * hidden_dim)           # fc_pos
    w0, b0 = linear(keys[1], 2 * hidden_dim, hidden_dim)        # fc_0
    w1, b1 = linear(keys[2], 2 * hidden_dim, hidden_dim)        # fc_1
    w2, b2 = linear(keys[3], 2 * hidden_dim, hidden_dim)        # fc_2
    w3, b3 = linear(keys[4], 2 * hidden_dim, hidden_dim)        # fc_3
    wc, bc = linear(keys[5], hidden_dim, c_dim)                 # fc_c
    return (wpos, bpos, w0, b0, w1, b1, w2, b2, w3, b3, wc, bc)


if __name__ == "__main__":
    # Small but lane/sublane-friendly shapes: 16 clouds of 16 points, H = c_dim = 128,
    # B_BLK = 8 -> grid of 2 parallel steps, 128-row MXU slabs, (8, 128) output blocks.
    B, T, D = 16, 16, 3
    hidden_dim, c_dim = 128, 128

    key = jax.random.PRNGKey(0)
    k_p, k_w = jax.random.split(key)
    p = jax.random.normal(k_p, (B, T, D), jnp.float32)
    params = init_params(k_w, D, hidden_dim, c_dim)

    ref = simple_pointnet_ref(p, params)

    # f32 matmul path.
    out_f32 = jax.block_until_ready(
        simple_pointnet_pallas(p, params, block_b=8, compute_dtype=jnp.float32))
    assert out_f32.shape == (B, c_dim)
    err32 = float(jnp.max(jnp.abs(out_f32 - ref)))
    assert jnp.allclose(out_f32, ref, atol=1e-3, rtol=1e-3), f"f32 max abs err {err32}"

    # bf16 matmul-operand path (v6e/v7x MXU-native); looser tolerance vs. the f32 reference.
    out_bf16 = jax.block_until_ready(
        simple_pointnet_pallas(p, params, block_b=8, compute_dtype=jnp.bfloat16))
    assert out_bf16.shape == (B, c_dim)
    errbf = float(jnp.max(jnp.abs(out_bf16 - ref)))
    assert jnp.allclose(out_bf16, ref, atol=1.5e-1, rtol=1.5e-1), f"bf16 max abs err {errbf}"

    print("KERNEL_OK")
</pallas_src>

<mosaic_0001>
module attributes {stable_mosaic.version = 11 : i64} {
  func.func @simple_pointnet_kernel(%arg0: i32, %arg1: memref<8x16x3xf32, #tpu.memory_space<vmem>>, %arg2: memref<3x256xf32, #tpu.memory_space<vmem>>, %arg3: memref<1x256xf32, #tpu.memory_space<vmem>>, %arg4: memref<256x128xf32, #tpu.memory_space<vmem>>, %arg5: memref<1x128xf32, #tpu.memory_space<vmem>>, %arg6: memref<128x128xf32, #tpu.memory_space<vmem>>, %arg7: memref<128x128xf32, #tpu.memory_space<vmem>>, %arg8: memref<1x128xf32, #tpu.memory_space<vmem>>, %arg9: memref<128x128xf32, #tpu.memory_space<vmem>>, %arg10: memref<128x128xf32, #tpu.memory_space<vmem>>, %arg11: memref<1x128xf32, #tpu.memory_space<vmem>>, %arg12: memref<128x128xf32, #tpu.memory_space<vmem>>, %arg13: memref<128x128xf32, #tpu.memory_space<vmem>>, %arg14: memref<1x128xf32, #tpu.memory_space<vmem>>, %arg15: memref<128x128xf32, #tpu.memory_space<vmem>>, %arg16: memref<1x128xf32, #tpu.memory_space<vmem>>, %arg17: memref<8x128xf32, #tpu.memory_space<vmem>>) attributes {dimension_semantics = [#tpu.dimension_semantics<parallel>], iteration_bounds = array<i64: 2>, scalar_prefetch = 0 : i64, scratch_operands = 0 : i64, tpu.core_type = #tpu.core_type<tc>, window_params = [{transform_indices = @transform_0, window_bounds = array<i64: 8, 16, 3>}, {pipeline_mode = #tpu.pipeline_mode<synchronous>, transform_indices = @transform_1, window_bounds = array<i64: 3, 256>}, {pipeline_mode = #tpu.pipeline_mode<synchronous>, transform_indices = @transform_2, window_bounds = array<i64: 1, 256>}, {pipeline_mode = #tpu.pipeline_mode<synchronous>, transform_indices = @transform_3, window_bounds = array<i64: 256, 128>}, {pipeline_mode = #tpu.pipeline_mode<synchronous>, transform_indices = @transform_4, window_bounds = array<i64: 1, 128>}, {pipeline_mode = #tpu.pipeline_mode<synchronous>, transform_indices = @transform_5, window_bounds = array<i64: 128, 128>}, {pipeline_mode = #tpu.pipeline_mode<synchronous>, transform_indices = @transform_6, window_bounds = array<i64: 128, 128>}, {pipeline_mode = #tpu.pipeline_mode<synchronous>, transform_indices = @transform_7, window_bounds = array<i64: 1, 128>}, {pipeline_mode = #tpu.pipeline_mode<synchronous>, transform_indices = @transform_8, window_bounds = array<i64: 128, 128>}, {pipeline_mode = #tpu.pipeline_mode<synchronous>, transform_indices = @transform_9, window_bounds = array<i64: 128, 128>}, {pipeline_mode = #tpu.pipeline_mode<synchronous>, transform_indices = @transform_10, window_bounds = array<i64: 1, 128>}, {pipeline_mode = #tpu.pipeline_mode<synchronous>, transform_indices = @transform_11, window_bounds = array<i64: 128, 128>}, {pipeline_mode = #tpu.pipeline_mode<synchronous>, transform_indices = @transform_12, window_bounds = array<i64: 128, 128>}, {pipeline_mode = #tpu.pipeline_mode<synchronous>, transform_indices = @transform_13, window_bounds = array<i64: 1, 128>}, {pipeline_mode = #tpu.pipeline_mode<synchronous>, transform_indices = @transform_14, window_bounds = array<i64: 128, 128>}, {pipeline_mode = #tpu.pipeline_mode<synchronous>, transform_indices = @transform_15, window_bounds = array<i64: 1, 128>}, {transform_indices = @transform_16, window_bounds = array<i64: 8, 128>}]} {
    %c0 = arith.constant 0 : index
    %c0_0 = arith.constant 0 : index
    %c0_1 = arith.constant 0 : index
    %0 = vector.load %arg1[%c0, %c0_0, %c0_1] : memref<8x16x3xf32, #tpu.memory_space<vmem>>, vector<8x16x3xf32>
    %1 = vector.shape_cast %0 : vector<8x16x3xf32> to vector<128x3xf32>
    %2 = vector.extract_strided_slice %1 {offsets = [0, 0], sizes = [128, 1], strides = [1, 1]} : vector<128x3xf32> to vector<128x1xf32>
    %c0_2 = arith.constant 0 : index
    %c0_3 = arith.constant 0 : index
    %3 = vector.load %arg2[%c0_2, %c0_3] : memref<3x256xf32, #tpu.memory_space<vmem>>, vector<1x256xf32>
    %4 = vector.broadcast %2 : vector<128x1xf32> to vector<128x256xf32>
    %5 = vector.broadcast %3 : vector<1x256xf32> to vector<128x256xf32>
    %6 = arith.mulf %4, %5 : vector<128x256xf32>
    %7 = vector.extract_strided_slice %1 {offsets = [0, 1], sizes = [128, 1], strides = [1, 1]} : vector<128x3xf32> to vector<128x1xf32>
    %c1 = arith.constant 1 : index
    %c0_4 = arith.constant 0 : index
    %8 = vector.load %arg2[%c1, %c0_4] : memref<3x256xf32, #tpu.memory_space<vmem>>, vector<1x256xf32>
    %9 = vector.broadcast %7 : vector<128x1xf32> to vector<128x256xf32>
    %10 = vector.broadcast %8 : vector<1x256xf32> to vector<128x256xf32>
    %11 = arith.mulf %9, %10 : vector<128x256xf32>
    %12 = arith.addf %6, %11 : vector<128x256xf32>
    %13 = vector.extract_strided_slice %1 {offsets = [0, 2], sizes = [128, 1], strides = [1, 1]} : vector<128x3xf32> to vector<128x1xf32>
    %c2 = arith.constant 2 : index
    %c0_5 = arith.constant 0 : index
    %14 = vector.load %arg2[%c2, %c0_5] : memref<3x256xf32, #tpu.memory_space<vmem>>, vector<1x256xf32>
    %15 = vector.broadcast %13 : vector<128x1xf32> to vector<128x256xf32>
    %16 = vector.broadcast %14 : vector<1x256xf32> to vector<128x256xf32>
    %17 = arith.mulf %15, %16 : vector<128x256xf32>
    %18 = arith.addf %12, %17 : vector<128x256xf32>
    %c0_6 = arith.constant 0 : index
    %c0_7 = arith.constant 0 : index
    %19 = vector.load %arg3[%c0_6, %c0_7] : memref<1x256xf32, #tpu.memory_space<vmem>>, vector<1x256xf32>
    %20 = vector.broadcast %19 : vector<1x256xf32> to vector<128x256xf32>
    %21 = arith.addf %18, %20 : vector<128x256xf32>
    %cst = arith.constant 0.000000e+00 : f32
    %22 = vector.broadcast %cst : f32 to vector<128x256xf32>
    %23 = arith.maximumf %21, %22 : vector<128x256xf32>
    %c0_8 = arith.constant 0 : index
    %c0_9 = arith.constant 0 : index
    %24 = vector.load %arg4[%c0_8, %c0_9] : memref<256x128xf32, #tpu.memory_space<vmem>>, vector<256x128xf32>
    %cst_10 = arith.constant dense<0.000000e+00> : vector<128x128xf32>
    %25 = tpu.matmul %23, %24, %cst_10 {dimension_numbers = #tpu.dot_dimension_numbers<[1], [0], [0], [1], [0, 0, 1, 1], [], []>} : vector<128x256xf32>, vector<256x128xf32>, vector<128x128xf32> -> vector<128x128xf32>
    %c0_11 = arith.constant 0 : index
    %c0_12 = arith.constant 0 : index
    %26 = vector.load %arg5[%c0_11, %c0_12] : memref<1x128xf32, #tpu.memory_space<vmem>>, vector<1x128xf32>
    %27 = vector.broadcast %26 : vector<1x128xf32> to vector<128x128xf32>
    %28 = arith.addf %25, %27 : vector<128x128xf32>
    %29 = vector.shape_cast %28 : vector<128x128xf32> to vector<8x16x128xf32>
    %cst_13 = arith.constant 0.000000e+00 : f32
    %30 = vector.broadcast %cst_13 : f32 to vector<8x16x128xf32>
    %31 = arith.maximumf %29, %30 : vector<8x16x128xf32>
    %cst_14 = arith.constant dense<0xFF800000> : vector<8x128xf32>
    %32 = vector.multi_reduction <maximumf>, %31, %cst_14 [1] : vector<8x16x128xf32> to vector<8x128xf32>
    %33 = vector.shape_cast %31 : vector<8x16x128xf32> to vector<128x128xf32>
    %c0_15 = arith.constant 0 : index
    %c0_16 = arith.constant 0 : index
    %34 = vector.load %arg6[%c0_15, %c0_16] : memref<128x128xf32, #tpu.memory_space<vmem>>, vector<128x128xf32>
    %cst_17 = arith.constant dense<0.000000e+00> : vector<128x128xf32>
    %35 = tpu.matmul %33, %34, %cst_17 {dimension_numbers = #tpu.dot_dimension_numbers<[1], [0], [0], [1], [0, 0, 1, 1], [], []>} : vector<128x128xf32>, vector<128x128xf32>, vector<128x128xf32> -> vector<128x128xf32>
    %c0_18 = arith.constant 0 : index
    %c0_19 = arith.constant 0 : index
    %36 = vector.load %arg7[%c0_18, %c0_19] : memref<128x128xf32, #tpu.memory_space<vmem>>, vector<128x128xf32>
    %cst_20 = arith.constant dense<0.000000e+00> : vector<8x128xf32>
    %37 = tpu.matmul %32, %36, %cst_20 {dimension_numbers = #tpu.dot_dimension_numbers<[1], [0], [0], [1], [0, 0, 1, 1], [], []>} : vector<8x128xf32>, vector<128x128xf32>, vector<8x128xf32> -> vector<8x128xf32>
    %c0_21 = arith.constant 0 : index
    %c0_22 = arith.constant 0 : index
    %38 = vector.load %arg8[%c0_21, %c0_22] : memref<1x128xf32, #tpu.memory_space<vmem>>, vector<1x128xf32>
    %39 = vector.broadcast %38 : vector<1x128xf32> to vector<8x128xf32>
    %40 = arith.addf %37, %39 : vector<8x128xf32>
    %41 = vector.shape_cast %35 : vector<128x128xf32> to vector<8x16x128xf32>
    %42 = vector.shape_cast %40 : vector<8x128xf32> to vector<8x1x128xf32>
    %43 = vector.broadcast %42 : vector<8x1x128xf32> to vector<8x16x128xf32>
    %44 = arith.addf %41, %43 : vector<8x16x128xf32>
    %cst_23 = arith.constant 0.000000e+00 : f32
    %45 = vector.broadcast %cst_23 : f32 to vector<8x16x128xf32>
    %46 = arith.maximumf %44, %45 : vector<8x16x128xf32>
    %cst_24 = arith.constant dense<0xFF800000> : vector<8x128xf32>
    %47 = vector.multi_reduction <maximumf>, %46, %cst_24 [1] : vector<8x16x128xf32> to vector<8x128xf32>
    %48 = vector.shape_cast %46 : vector<8x16x128xf32> to vector<128x128xf32>
    %c0_25 = arith.constant 0 : index
    %c0_26 = arith.constant 0 : index
    %49 = vector.load %arg9[%c0_25, %c0_26] : memref<128x128xf32, #tpu.memory_space<vmem>>, vector<128x128xf32>
    %cst_27 = arith.constant dense<0.000000e+00> : vector<128x128xf32>
    %50 = tpu.matmul %48, %49, %cst_27 {dimension_numbers = #tpu.dot_dimension_numbers<[1], [0], [0], [1], [0, 0, 1, 1], [], []>} : vector<128x128xf32>, vector<128x128xf32>, vector<128x128xf32> -> vector<128x128xf32>
    %c0_28 = arith.constant 0 : index
    %c0_29 = arith.constant 0 : index
    %51 = vector.load %arg10[%c0_28, %c0_29] : memref<128x128xf32, #tpu.memory_space<vmem>>, vector<128x128xf32>
    %cst_30 = arith.constant dense<0.000000e+00> : vector<8x128xf32>
    %52 = tpu.matmul %47, %51, %cst_30 {dimension_numbers = #tpu.dot_dimension_numbers<[1], [0], [0], [1], [0, 0, 1, 1], [], []>} : vector<8x128xf32>, vector<128x128xf32>, vector<8x128xf32> -> vector<8x128xf32>
    %c0_31 = arith.constant 0 : index
    %c0_32 = arith.constant 0 : index
    %53 = vector.load %arg11[%c0_31, %c0_32] : memref<1x128xf32, #tpu.memory_space<vmem>>, vector<1x128xf32>
    %54 = vector.broadcast %53 : vector<1x128xf32> to vector<8x128xf32>
    %55 = arith.addf %52, %54 : vector<8x128xf32>
    %56 = vector.shape_cast %50 : vector<128x128xf32> to vector<8x16x128xf32>
    %57 = vector.shape_cast %55 : vector<8x128xf32> to vector<8x1x128xf32>
    %58 = vector.broadcast %57 : vector<8x1x128xf32> to vector<8x16x128xf32>
    %59 = arith.addf %56, %58 : vector<8x16x128xf32>
    %cst_33 = arith.constant 0.000000e+00 : f32
    %60 = vector.broadcast %cst_33 : f32 to vector<8x16x128xf32>
    %61 = arith.maximumf %59, %60 : vector<8x16x128xf32>
    %cst_34 = arith.constant dense<0xFF800000> : vector<8x128xf32>
    %62 = vector.multi_reduction <maximumf>, %61, %cst_34 [1] : vector<8x16x128xf32> to vector<8x128xf32>
    %63 = vector.shape_cast %61 : vector<8x16x128xf32> to vector<128x128xf32>
    %c0_35 = arith.constant 0 : index
    %c0_36 = arith.constant 0 : index
    %64 = vector.load %arg12[%c0_35, %c0_36] : memref<128x128xf32, #tpu.memory_space<vmem>>, vector<128x128xf32>
    %cst_37 = arith.constant dense<0.000000e+00> : vector<128x128xf32>
    %65 = tpu.matmul %63, %64, %cst_37 {dimension_numbers = #tpu.dot_dimension_numbers<[1], [0], [0], [1], [0, 0, 1, 1], [], []>} : vector<128x128xf32>, vector<128x128xf32>, vector<128x128xf32> -> vector<128x128xf32>
    %c0_38 = arith.constant 0 : index
    %c0_39 = arith.constant 0 : index
    %66 = vector.load %arg13[%c0_38, %c0_39] : memref<128x128xf32, #tpu.memory_space<vmem>>, vector<128x128xf32>
    %cst_40 = arith.constant dense<0.000000e+00> : vector<8x128xf32>
    %67 = tpu.matmul %62, %66, %cst_40 {dimension_numbers = #tpu.dot_dimension_numbers<[1], [0], [0], [1], [0, 0, 1, 1], [], []>} : vector<8x128xf32>, vector<128x128xf32>, vector<8x128xf32> -> vector<8x128xf32>
    %c0_41 = arith.constant 0 : index
    %c0_42 = arith.constant 0 : index
    %68 = vector.load %arg14[%c0_41, %c0_42] : memref<1x128xf32, #tpu.memory_space<vmem>>, vector<1x128xf32>
    %69 = vector.broadcast %68 : vector<1x128xf32> to vector<8x128xf32>
    %70 = arith.addf %67, %69 : vector<8x128xf32>
    %71 = vector.shape_cast %65 : vector<128x128xf32> to vector<8x16x128xf32>
    %72 = vector.shape_cast %70 : vector<8x128xf32> to vector<8x1x128xf32>
    %73 = vector.broadcast %72 : vector<8x1x128xf32> to vector<8x16x128xf32>
    %74 = arith.addf %71, %73 : vector<8x16x128xf32>
    %cst_43 = arith.constant 0.000000e+00 : f32
    %75 = vector.broadcast %cst_43 : f32 to vector<8x16x128xf32>
    %76 = arith.maximumf %74, %75 : vector<8x16x128xf32>
    %cst_44 = arith.constant dense<0xFF800000> : vector<8x128xf32>
    %77 = vector.multi_reduction <maximumf>, %76, %cst_44 [1] : vector<8x16x128xf32> to vector<8x128xf32>
    %c0_45 = arith.constant 0 : index
    %c0_46 = arith.constant 0 : index
    %78 = vector.load %arg15[%c0_45, %c0_46] : memref<128x128xf32, #tpu.memory_space<vmem>>, vector<128x128xf32>
    %cst_47 = arith.constant dense<0.000000e+00> : vector<8x128xf32>
    %79 = tpu.matmul %77, %78, %cst_47 {dimension_numbers = #tpu.dot_dimension_numbers<[1], [0], [0], [1], [0, 0, 1, 1], [], []>} : vector<8x128xf32>, vector<128x128xf32>, vector<8x128xf32> -> vector<8x128xf32>
    %c0_48 = arith.constant 0 : index
    %c0_49 = arith.constant 0 : index
    %80 = vector.load %arg16[%c0_48, %c0_49] : memref<1x128xf32, #tpu.memory_space<vmem>>, vector<1x128xf32>
    %81 = vector.broadcast %80 : vector<1x128xf32> to vector<8x128xf32>
    %82 = arith.addf %79, %81 : vector<8x128xf32>
    %c0_50 = arith.constant 0 : index
    %c0_51 = arith.constant 0 : index
    %83 = vector.load %arg17[%c0_50, %c0_51] : memref<8x128xf32, #tpu.memory_space<vmem>>, vector<8x128xf32>
    tpu.vector_store %arg17[%c0_50, %c0_51], %82 {strides = array<i32>} : memref<8x128xf32, #tpu.memory_space<vmem>>, vector<8x128xf32>,
    return
  }
  func.func @transform_0(%arg0: i32) -> (i32, i32, i32) {
    %c0_i32 = arith.constant 0 : i32
    %c0_i32_0 = arith.constant 0 : i32
    %c0_i32_1 = arith.constant 0 : i32
    return %arg0, %c0_i32, %c0_i32_0 : i32, i32, i32
  }
  func.func @transform_1(%arg0: i32) -> (i32, i32) {
    %c0_i32 = arith.constant 0 : i32
    %c0_i32_0 = arith.constant 0 : i32
    %c0_i32_1 = arith.constant 0 : i32
    return %c0_i32, %c0_i32_0 : i32, i32
  }
  func.func @transform_2(%arg0: i32) -> (i32, i32) {
    %c0_i32 = arith.constant 0 : i32
    %c0_i32_0 = arith.constant 0 : i32
    %c0_i32_1 = arith.constant 0 : i32
    return %c0_i32, %c0_i32_0 : i32, i32
  }
  func.func @transform_3(%arg0: i32) -> (i32, i32) {
    %c0_i32 = arith.constant 0 : i32
    %c0_i32_0 = arith.constant 0 : i32
    %c0_i32_1 = arith.constant 0 : i32
    return %c0_i32, %c0_i32_0 : i32, i32
  }
  func.func @transform_4(%arg0: i32) -> (i32, i32) {
    %c0_i32 = arith.constant 0 : i32
    %c0_i32_0 = arith.constant 0 : i32
    %c0_i32_1 = arith.constant 0 : i32
    return %c0_i32, %c0_i32_0 : i32, i32
  }
  func.func @transform_5(%arg0: i32) -> (i32, i32) {
    %c0_i32 = arith.constant 0 : i32
    %c0_i32_0 = arith.constant 0 : i32
    %c0_i32_1 = arith.constant 0 : i32
    return %c0_i32, %c0_i32_0 : i32, i32
  }
  func.func @transform_6(%arg0: i32) -> (i32, i32) {
    %c0_i32 = arith.constant 0 : i32
    %c0_i32_0 = arith.constant 0 : i32
    %c0_i32_1 = arith.constant 0 : i32
    return %c0_i32, %c0_i32_0 : i32, i32
  }
  func.func @transform_7(%arg0: i32) -> (i32, i32) {
    %c0_i32 = arith.constant 0 : i32
    %c0_i32_0 = arith.constant 0 : i32
    %c0_i32_1 = arith.constant 0 : i32
    return %c0_i32, %c0_i32_0 : i32, i32
  }
  func.func @transform_8(%arg0: i32) -> (i32, i32) {
    %c0_i32 = arith.constant 0 : i32
    %c0_i32_0 = arith.constant 0 : i32
    %c0_i32_1 = arith.constant 0 : i32
    return %c0_i32, %c0_i32_0 : i32, i32
  }
  func.func @transform_9(%arg0: i32) -> (i32, i32) {
    %c0_i32 = arith.constant 0 : i32
    %c0_i32_0 = arith.constant 0 : i32
    %c0_i32_1 = arith.constant 0 : i32
    return %c0_i32, %c0_i32_0 : i32, i32
  }
  func.func @transform_10(%arg0: i32) -> (i32, i32) {
    %c0_i32 = arith.constant 0 : i32
    %c0_i32_0 = arith.constant 0 : i32
    %c0_i32_1 = arith.constant 0 : i32
    return %c0_i32, %c0_i32_0 : i32, i32
  }
  func.func @transform_11(%arg0: i32) -> (i32, i32) {
    %c0_i32 = arith.constant 0 : i32
    %c0_i32_0 = arith.constant 0 : i32
    %c0_i32_1 = arith.constant 0 : i32
    return %c0_i32, %c0_i32_0 : i32, i32
  }
  func.func @transform_12(%arg0: i32) -> (i32, i32) {
    %c0_i32 = arith.constant 0 : i32
    %c0_i32_0 = arith.constant 0 : i32
    %c0_i32_1 = arith.constant 0 : i32
    return %c0_i32, %c0_i32_0 : i32, i32
  }
  func.func @transform_13(%arg0: i32) -> (i32, i32) {
    %c0_i32 = arith.constant 0 : i32
    %c0_i32_0 = arith.constant 0 : i32
    %c0_i32_1 = arith.constant 0 : i32
    return %c0_i32, %c0_i32_0 : i32, i32
  }
  func.func @transform_14(%arg0: i32) -> (i32, i32) {
    %c0_i32 = arith.constant 0 : i32
    %c0_i32_0 = arith.constant 0 : i32
    %c0_i32_1 = arith.constant 0 : i32
    return %c0_i32, %c0_i32_0 : i32, i32
  }
  func.func @transform_15(%arg0: i32) -> (i32, i32) {
    %c0_i32 = arith.constant 0 : i32
    %c0_i32_0 = arith.constant 0 : i32
    %c0_i32_1 = arith.constant 0 : i32
    return %c0_i32, %c0_i32_0 : i32, i32
  }
  func.func @transform_16(%arg0: i32) -> (i32, i32) {
    %c0_i32 = arith.constant 0 : i32
    %c0_i32_0 = arith.constant 0 : i32
    return %arg0, %c0_i32 : i32, i32
  }
}

</mosaic_0001>

<bundles_post_ra>
// kernel: tpu_custom_call.1
= control target key start
LH: loop header
LB: loop body
LE: loop exit
PB: predicated region body
PF: predicated region fallthrough
CT: control target
= control target key end

     0   :  { %s5231_s0 = inlined_call_operand.vmem [shape: f32[16,16,3], index: 0, kind: input, shape index: {}]   ;;  %s5232_s1 = inlined_call_operand.vmem [shape: f32[3,256], index: 1, kind: input, shape index: {}]   ;;  %s5233_s2 = inlined_call_operand.vmem [shape: f32[1,256], index: 2, kind: input, shape index: {}]   ;;  %s5234_s3 = inlined_call_operand.vmem [shape: f32[256,128], index: 3, kind: input, shape index: {}]   ;;  %s5235_s4 = inlined_call_operand.vmem [shape: f32[1,128], index: 4, kind: input, shape index: {}]   ;;  %s5236_s5 = inlined_call_operand.hbm [shape: f32[128,128], index: 5, kind: input, shape index: {}]   ;;  %s5237_s6 = inlined_call_operand.hbm [shape: f32[128,128], index: 6, kind: input, shape index: {}]   ;;  %s5238_s7 = inlined_call_operand.vmem [shape: f32[1,128], index: 7, kind: input, shape index: {}]   ;;  %s5239_s8 = inlined_call_operand.hbm [shape: f32[128,128], index: 8, kind: input, shape index: {}]   ;;  %s5240_s9 = inlined_call_operand.hbm [shape: f32[128,128], index: 9, kind: input, shape index: {}]   ;;  %s5241_s10 = inlined_call_operand.vmem [shape: f32[1,128], index: 10, kind: input, shape index: {}]   ;;  %s5242_s11 = inlined_call_operand.hbm [shape: f32[128,128], index: 11, kind: input, shape index: {}]   ;;  %s5243_s12 = inlined_call_operand.hbm [shape: f32[128,128], index: 12, kind: input, shape index: {}]   ;;  %s5244_s13 = inlined_call_operand.vmem [shape: f32[1,128], index: 13, kind: input, shape index: {}]   ;;  %s5245_s14 = inlined_call_operand.hbm [shape: f32[128,128], index: 14, kind: input, shape index: {}]   ;;  %s5246_s15 = inlined_call_operand.vmem [shape: f32[1,128], index: 15, kind: input, shape index: {}]   ;;  %s5247_s16 = inlined_call_operand.hbm [shape: f32[16,128], index: 16, kind: output, shape index: {}]  }
   0x1   :  { %5261 = sst [smem:[#allocation28_spill]] %s5231_s0 }
   0x2   :  { %5262 = sst [smem:[#allocation29_spill]] %s5237_s6 }
   0x3   :  { %5263 = sst [smem:[#allocation30_spill]] %s5244_s13 }
   0x4   :  { %5264 = sst [smem:[#allocation31_spill]] %s5246_s15 }
   0x5   :  { %5265 = sst [smem:[#allocation32_spill]] %s5247_s16 }
   0x6   :  { %21 = vsyncpa [#allocation3], 0 }
   0x7   :  { %22 = vsyncpa [#allocation6], 0 }
   0x8   :  { %23 = vsyncpa [#allocation9], 0 }
   0x9   :  { %24 = vsyncpa [#allocation12], 0 }
   0xa   :  { %25 = vsyncpa [#allocation4], 0 }
   0xb   :  { %27 = vsyncpa [#allocation4 + $0x1], 0  ;;  %s4328_s21 = smov 0   ;;  %s4330_s22 = smov 0  }
   0xc   :  { %s4332_s23 = smov 0   ;;  %s4334_s24 = smov 0  }
   0xd LB: > { %5266 = sst [smem:[#allocation20_spill]] %s4212_s21  ;;  %s4349_s25 = sadd.s32 4294967295, %s4224_s24   ;;  %s4224_s24 = sphi %s4334_s24, %s5301_s24   ;;  %s4220_s23 = sphi %s4332_s23, %s5304_s23   ;;  %s4216_s22 = sphi %s4330_s22, %s5303_s22   ;;  %s4212_s21 = sphi %s4328_s21, %s5302_s21  }
   0xe   : > { %5267 = sst [smem:[#allocation21_spill]] %s4216_s22  ;;  %s2984_s26 = sadd.s32 4294967294, %s4224_s24  }
   0xf   : > { %5268 = sst [smem:[#allocation22_spill]] %s4220_s23  ;;  %s4353_s27 = sadd.s32 1, %s4224_s24  }
  0x10   : > { %5269 = sst [smem:[#allocation23_spill]] %s4224_s24  ;;  %s381_s28 = sadd.s32 1, %s4220_s23 }
  0x11   : > { %5270 = sst [smem:[#allocation24_spill]] %s4353_s27  ;;  %s378_s29 = ssub.s32 %s4224_s24, %s4353_s27 }
  0x12   : > { %p391_p0 = scmp.ne.s32.totalorder %s4220_s23, %s4216_s22  ;;  %p379_p1 = scmp.eq.s32.totalorder %s378_s29, 0 }
  0x13   : > { %p392_p2 = scmp.eq.s32.totalorder %s4349_s25, 1  ;;  %p397_p3 = scmp.ne.s32.totalorder %s4216_s22, %s4212_s21 }
  0x14   : > { %p398_p4 = scmp.eq.s32.totalorder %s2984_s26, 1  ;;  %p2985_p7 = scmp.ge.s32.totalorder %s4224_s24, 1 }
  0x15   : > { %s4364_s30 = scalar_select %p379_p1, %s4220_s23, %s381_s28  }
  0x16   : > { %p4366_p5 = por %p392_p2, %p391_p0  ;;  %p4370_p6 = por %p398_p4, %p397_p3 }
  0x17   : > { %5271 = sst [smem:[#allocation25_spill]] %s4364_s30  ;;  %p405_p8 = scmp.lt.s32.totalorder %s4224_s24, 3 }
  0x18   : > { %s5272_s0 = scalar_select %p4366_p5, 1, 0 }
  0x19   : > { %s5274_s17 = scalar_select %p4370_p6, 1, 0 }
  0x1a   : > { %5273 = sst [smem:[#allocation26_spill]] %s5272_s0  ;;  %p5255_p9 = scmp.eq.s32.totalorder %s4349_s25, 0 }
  0x1b   : > { %5275 = sst [smem:[#allocation27_spill]] %s5274_s17  ;;  %p4377_p10 = pnand %p2985_p7, %p405_p8 }
  0x1c   : > { %s4226_s19 = smov [#allocation5]   ;;  %s4227_s28 = smov [#allocation8]  }
  0x1d   : > { %s5276_s18 = scalar_select %p4377_p10, 1, 0 }
  0x1e   : > { %p3824_p11 = pneg %p4377_p10  ;;  %s442_s20 = sshll.u32 %s4226_s19, 4  ;;  %s4383_s20 = int_to_ptr.vmem [resolvable:$true] %s442_s20 }
  0x1f   : > { %s471_s29 = sshll.u32 %s4227_s28, 4  ;;  %s4228_s30 = smov [#allocation11]   ;;  %s4391_s29 = int_to_ptr.vmem [resolvable:$true] %s471_s29 }
  0x20   : > { %p4387_p12 = pnand %p5255_p9, %p3824_p11  ;;  %s4393_s23 = sshll.u32 %s4228_s30, 4  ;;  %s501_s23 = int_to_ptr.vmem [resolvable:$true] %s4393_s23 }
  0x21   : > { %s5278_s6 = sld [smem:[#allocation29_spill]] }
  0x22   : > { %p4403_p0 = pneg %p4387_p12 }
  0x27   : > { %s3950_s21 = scalar_lea.hbm %s5278_s6, 2048 }
  0x28   : > { %p3951_p13 = scmp.ne.s32.totalorder %s5278_s6, %s3950_s21  ;;  %p3957_p3 = scmp.lt.u32.totalorder %s3950_s21, %s5278_s6 }
  0x2a   : > { %p3953_p1 = pnand %p4403_p0, %p3951_p13 }
  0x2c   : > { %p3954_p2 = pneg %p3953_p1 }
  0x2e   : > { %p3959_p4 = pnand %p3957_p3, %p3954_p2 }
  0x30   : > { %3962 = shalt.err (!%p3959_p4)
}
  0x31   : > { %s3963_s24 = scalar_lea.vmem %s4383_s20, 2048  ;;  %p3971_p9 = scmp.lt.s32.totalorder %s4383_s20, %s4383_s20 }
  0x32   : > { %p3964_p7 = scmp.ne.s32.totalorder %s4383_s20, %s3963_s24  ;;  %p3972_p6 = scmp.lt.s32.totalorder %s3963_s24, %s3963_s24 }
  0x34   : > { %p3966_p8 = pnand %p3964_p7, %p4403_p0  ;;  %p3973_p13 = por %p3972_p6, %p3971_p9 }
  0x36   : > { %p3967_p11 = pneg %p3966_p8 }
  0x38   : > { %p3974_p1 = pnand %p3973_p13, %p3967_p11 }
  0x3a   : > { %3977 = shalt.err (!%p3974_p1)
}
  0x3b   : > { %s4229_s27 = smov 128   ;;  %s4230_s21 = smov 8  }
  0x3c   : > { %3830 = dma.hbm_to_vmem [thread:$0]  (!%p4387_p12), %s5278_s6, 2048, %s4383_s20, [#allocation6], %s4229_s27, %s4229_s27, %s4230_s21  }
  0x3d   : > { %s3978_s24 = scalar_lea.hbm %s5240_s9, 2048 }
  0x3e   : > { %p3979_p6 = scmp.ne.s32.totalorder %s5240_s9, %s3978_s24  ;;  %p3985_p3 = scmp.lt.u32.totalorder %s3978_s24, %s5240_s9 }
  0x40   : > { %p3981_p9 = pnand %p3979_p6, %p4403_p0 }
  0x42   : > { %p3982_p2 = pneg %p3981_p9 }
  0x44   : > { %p3987_p4 = pnand %p3985_p3, %p3982_p2 }
  0x46   : > { %3990 = shalt.err (!%p3987_p4)
}
  0x47   : > { %s3991_s20 = scalar_lea.vmem %s4391_s29, 2048  ;;  %p3999_p13 = scmp.lt.s32.totalorder %s4391_s29, %s4391_s29 }
  0x48   : > { %p3992_p7 = scmp.ne.s32.totalorder %s4391_s29, %s3991_s20  ;;  %p4000_p1 = scmp.lt.s32.totalorder %s3991_s20, %s3991_s20 }
  0x4a   : > { %p3994_p8 = pnand %p3992_p7, %p4403_p0  ;;  %p4001_p6 = por %p4000_p1, %p3999_p13 }
  0x4c   : > { %p3995_p11 = pneg %p3994_p8 }
  0x4e   : > { %p4002_p9 = pnand %p4001_p6, %p3995_p11 }
  0x50   : > { %4005 = shalt.err (!%p4002_p9)
}
  0x51   : > { %3836 = dma.hbm_to_vmem [thread:$0]  (!%p4387_p12), %s5240_s9, 2048, %s4391_s29, [#allocation9], %s4229_s27, %s4229_s27, %s4230_s21  }
  0x52   : > { %s4006_s17 = scalar_lea.hbm %s5243_s12, 2048 }
  0x53   : > { %p4007_p2 = scmp.ne.s32.totalorder %s5243_s12, %s4006_s17  ;;  %p4013_p7 = scmp.lt.u32.totalorder %s4006_s17, %s5243_s12 }
  0x55   : > { %p4009_p3 = pnand %p4007_p2, %p4403_p0 }
  0x57   : > { %p4010_p4 = pneg %p4009_p3 }
  0x59   : > { %p4015_p8 = pnand %p4013_p7, %p4010_p4 }
  0x5b   : > { %4018 = shalt.err (!%p4015_p8)
}
  0x5c   : > { %s4019_s20 = scalar_lea.vmem %s501_s23, 2048  ;;  %p4027_p6 = scmp.lt.s32.totalorder %s501_s23, %s501_s23 }
  0x5d   : > { %p4020_p11 = scmp.ne.s32.totalorder %s501_s23, %s4019_s20  ;;  %p4028_p9 = scmp.lt.s32.totalorder %s4019_s20, %s4019_s20 }
  0x5f   : > { %p4022_p13 = pnand %p4020_p11, %p4403_p0  ;;  %p4029_p5 = por %p4028_p9, %p4027_p6 }
  0x61   : > { %p4023_p1 = pneg %p4022_p13 }
  0x63   : > { %p4030_p10 = pnand %p4029_p5, %p4023_p1 }
  0x65   : > { %4033 = shalt.err (!%p4030_p10)
}
  0x66   : > { %3842 = dma.hbm_to_vmem [thread:$0]  (!%p4387_p12), %s5243_s12, 2048, %s501_s23, [#allocation12], %s4229_s27, %s4229_s27, %s4230_s21  }
  0x67   : > { %s4231_s15 = smov [#allocation2]   ;;  %s4232_s0 = smov [#allocation7]  }
  0x68   : > { %s429_s22 = sshll.u32 %s4231_s15, 4  ;;  %s458_s17 = sshll.u32 %s4232_s0, 4  ;;  %s430_s22 = int_to_ptr.vmem [resolvable:$true] %s429_s22  ;;  %s459_s17 = int_to_ptr.vmem [resolvable:$true] %s458_s17 }
  0x69   : > { %s4034_s30 = scalar_lea.hbm %s5236_s5, 2048 }
  0x6a   : > { %p4035_p5 = scmp.ne.s32.totalorder %s5236_s5, %s4034_s30  ;;  %p4041_p3 = scmp.lt.u32.totalorder %s4034_s30, %s5236_s5 }
  0x6c   : > { %p4037_p10 = pnand %p4035_p5, %p4403_p0 }
  0x6e   : > { %p4038_p2 = pneg %p4037_p10 }
  0x70   : > { %p4043_p4 = pnand %p4041_p3, %p4038_p2 }
  0x72   : > { %4046 = shalt.err (!%p4043_p4)
}
  0x73   : > { %s4047_s23 = scalar_lea.vmem %s430_s22, 2048  ;;  %p4055_p13 = scmp.lt.s32.totalorder %s430_s22, %s430_s22 }
  0x74   : > { %p4048_p7 = scmp.ne.s32.totalorder %s430_s22, %s4047_s23  ;;  %p4056_p1 = scmp.lt.s32.totalorder %s4047_s23, %s4047_s23 }
  0x76   : > { %p4050_p8 = pnand %p4048_p7, %p4403_p0  ;;  %p4057_p6 = por %p4056_p1, %p4055_p13 }
  0x78   : > { %p4051_p11 = pneg %p4050_p8 }
  0x7a   : > { %p4058_p9 = pnand %p4057_p6, %p4051_p11 }
  0x7c   : > { %4061 = shalt.err (!%p4058_p9)
}
  0x7d   : > { %3827 = dma.hbm_to_vmem [thread:$0]  (!%p4387_p12), %s5236_s5, 2048, %s430_s22, [#allocation3], %s4229_s27, %s4229_s27, %s4230_s21  }
  0x7e   : > { %s4062_s19 = scalar_lea.hbm %s5239_s8, 2048 }
  0x7f   : > { %p4063_p5 = scmp.ne.s32.totalorder %s5239_s8, %s4062_s19  ;;  %p4069_p3 = scmp.lt.u32.totalorder %s4062_s19, %s5239_s8 }
  0x81   : > { %p4065_p10 = pnand %p4063_p5, %p4403_p0 }
  0x83   : > { %p4066_p2 = pneg %p4065_p10 }
  0x85   : > { %p4071_p4 = pnand %p4069_p3, %p4066_p2 }
  0x87   : > { %4074 = shalt.err (!%p4071_p4)
}
  0x88   : > { %s4075_s29 = scalar_lea.vmem %s459_s17, 2048  ;;  %p4083_p13 = scmp.lt.s32.totalorder %s459_s17, %s459_s17 }
  0x89   : > { %p4076_p7 = scmp.ne.s32.totalorder %s459_s17, %s4075_s29  ;;  %p4084_p1 = scmp.lt.s32.totalorder %s4075_s29, %s4075_s29 }
  0x8b   : > { %p4078_p8 = pnand %p4076_p7, %p4403_p0  ;;  %p4085_p6 = por %p4084_p1, %p4083_p13 }
  0x8d   : > { %p4079_p11 = pneg %p4078_p8 }
  0x8f   : > { %p4086_p9 = pnand %p4085_p6, %p4079_p11 }
  0x91   : > { %4089 = shalt.err (!%p4086_p9)
}
  0x92   : > { %3833 = dma.hbm_to_vmem [thread:$0]  (!%p4387_p12), %s5239_s8, 2048, %s459_s17, [#allocation6], %s4229_s27, %s4229_s27, %s4230_s21  }
  0x93   : > { %s4233_s6 = smov [#allocation10]   ;;  %s4234_s15 = smov [#allocation13]  }
  0x94   : > { %s487_s13 = sshll.u32 %s4233_s6, 4  ;;  %s516_s0 = sshll.u32 %s4234_s15, 4  ;;  %s488_s13 = int_to_ptr.vmem [resolvable:$true] %s487_s13  ;;  %s517_s0 = int_to_ptr.vmem [resolvable:$true] %s516_s0 }
  0x95   : > { %s4090_s30 = scalar_lea.hbm %s5242_s11, 2048 }
  0x96   : > { %p4091_p5 = scmp.ne.s32.totalorder %s5242_s11, %s4090_s30  ;;  %p4097_p3 = scmp.lt.u32.totalorder %s4090_s30, %s5242_s11 }
  0x98   : > { %p4093_p10 = pnand %p4091_p5, %p4403_p0 }
  0x9a   : > { %p4094_p2 = pneg %p4093_p10 }
  0x9c   : > { %p4099_p4 = pnand %p4097_p3, %p4094_p2 }
  0x9e   : > { %4102 = shalt.err (!%p4099_p4)
}
  0x9f   : > { %s4103_s17 = scalar_lea.vmem %s488_s13, 2048  ;;  %p4111_p13 = scmp.lt.s32.totalorder %s488_s13, %s488_s13 }
  0xa0   : > { %p4104_p7 = scmp.ne.s32.totalorder %s488_s13, %s4103_s17  ;;  %p4112_p1 = scmp.lt.s32.totalorder %s4103_s17, %s4103_s17 }
  0xa2   : > { %p4106_p8 = pnand %p4104_p7, %p4403_p0  ;;  %p4113_p6 = por %p4112_p1, %p4111_p13 }
  0xa4   : > { %p4107_p11 = pneg %p4106_p8 }
  0xa6   : > { %p4114_p9 = pnand %p4113_p6, %p4107_p11 }
  0xa8   : > { %4117 = shalt.err (!%p4114_p9)
}
  0xa9   : > { %3839 = dma.hbm_to_vmem [thread:$0]  (!%p4387_p12), %s5242_s11, 2048, %s488_s13, [#allocation9], %s4229_s27, %s4229_s27, %s4230_s21  }
  0xaa   : > { %s4118_s28 = scalar_lea.hbm %s5245_s14, 2048 }
  0xab   : > { %p4119_p5 = scmp.ne.s32.totalorder %s5245_s14, %s4118_s28  ;;  %p4125_p3 = scmp.lt.u32.totalorder %s4118_s28, %s5245_s14 }
  0xad   : > { %p4121_p10 = pnand %p4119_p5, %p4403_p0 }
  0xaf   : > { %p4122_p2 = pneg %p4121_p10 }
  0xb1   : > { %p4127_p4 = pnand %p4125_p3, %p4122_p2 }
  0xb3   : > { %4130 = shalt.err (!%p4127_p4)
}
  0xb4   : > { %s4131_s22 = scalar_lea.vmem %s517_s0, 2048  ;;  %p4139_p13 = scmp.lt.s32.totalorder %s517_s0, %s517_s0 }
  0xb5   : > { %p4132_p7 = scmp.ne.s32.totalorder %s517_s0, %s4131_s22  ;;  %p4140_p1 = scmp.lt.s32.totalorder %s4131_s22, %s4131_s22 }
  0xb7   : > { %p4134_p8 = pnand %p4132_p7, %p4403_p0  ;;  %p4141_p6 = por %p4140_p1, %p4139_p13 }
  0xb9   : > { %p4135_p11 = pneg %p4134_p8 }
  0xbb   : > { %p4142_p9 = pnand %p4141_p6, %p4135_p11 }
  0xbd   : > { %4145 = shalt.err (!%p4142_p9)
}
  0xbe   : > { %3845 = dma.hbm_to_vmem [thread:$0]  (!%p4387_p12), %s5245_s14, 2048, %s517_s0, [#allocation12], %s4229_s27, %s4229_s27, %s4230_s21  }
  0xbf   : > { %p5280_p5 = scmp.ne.s32.totalorder %s5276_s18, 0 }
  0xc0   : > { %p5281_p0 = scmp.eq.s32.totalorder (!%p5280_p5), %s4349_s25, 0 }
  0xc1   : > { %545 = sbr.rel (%p5280_p5) target bundleno = 1727 (0x6bf), region = 84 }
  0xc8   : > { %4191 = dma.done.wait (%p5281_p0), [#allocation3], 2048   ;;  %p5282_p10 = pmov %p5281_p0 }
  0xc9   : > { %p5283_p2 = pmov %p5281_p0 }
  0xca   : > { %4193 = vsyncadd (%p5282_p10), [#allocation3], 4294965248 }
  0xcb   : > { %4195 = dma.done.wait (%p5283_p2), [#allocation6], 4096   ;;  %p5284_p3 = pmov %p5281_p0 }
  0xcc   : > { %p5285_p4 = pmov %p5281_p0 }
  0xcd   : > { %4197 = vsyncadd (%p5284_p3), [#allocation6], 4294963200 }
  0xce   : > { %4199 = dma.done.wait (%p5285_p4), [#allocation9], 4096   ;;  %p5286_p12 = pmov %p5281_p0 }
  0xcf   : > { %p5287_p7 = pmov %p5281_p0 }
  0xd0   : > { %4201 = vsyncadd (%p5286_p12), [#allocation9], 4294963200 }
  0xd1   : > { %4203 = dma.done.wait (%p5287_p7), [#allocation12], 4096   ;;  %p5288_p8 = pmov %p5281_p0 }
  0xd2   : > { %s3003_s16 = sshll.u32 %s4349_s25, 3  ;;  %v4235_v0 = vmov 2   ;;  %v4236_v1 = vmov 0   ;;  %s5289_s21 = sld [smem:[#allocation28_spill]]  ;;  %v1141_v4 = vld [vmem:[%s5234_s3 + $0x80] sm:$0xff]  ;;  %v1142_v5 = vld [vmem:[%s5234_s3 + $0x88] sm:$0xff] }
  0xd3   : > { %4205 = vsyncadd (%p5288_p8), [#allocation12], 4294963200  ;;  %3914 = vset.pattern.permute.xlu1 %v4235_v0  ;;  %3913 = vset.pattern.permute.xlu0 %v4236_v1  ;;  %p621_p11 = scmp.lt.s32.totalorder %s3003_s16, 15  ;;  %v3570_v7 = vpack.c.bf16 %v1142_v5, %v1141_v4  ;;  %v1125_v8 = vld [vmem:[%s5234_s3] sm:$0xff]  ;;  %v1126_v9 = vld [vmem:[%s5234_s3 + $0x8] sm:$0xff]  ;;  %v4237_v19 = vmov 1  }
  0xd4   : > { %v3572_v10 = vpack.c.bf16 %v1126_v9, %v1125_v8  ;;  %v1143_v11 = vld [vmem:[%s5234_s3 + $0x90] sm:$0xff]  ;;  %v1144_v12 = vld [vmem:[%s5234_s3 + $0x98] sm:$0xff]  ;;  %v1145_v16 = vld [vmem:[%s5234_s3 + $0xa0] sm:$0xff]  ;;  %vm1573_vm0 = vcmask 1041409   ;;  %vm1575_vm1 = vcmask 1042434   ;;  %vm1577_vm2 = vcmask 1043459  }
  0xd5   : > { %s5306_s16 = smov (!%p621_p11, %s3003_s16), 15  ;;  %v1127_v13 = vld [vmem:[%s5234_s3 + $0x10] sm:$0xff]  ;;  %3571 = vmatprep.subr.bf16.mxu0 %v3570_v7  ;;  %v3574_v14 = vpack.c.bf16 %v1144_v12, %v1143_v11  ;;  %v1128_v15 = vld [vmem:[%s5234_s3 + $0x18] sm:$0xff]  ;;  %v1146_v18 = vld [vmem:[%s5234_s3 + $0xa8] sm:$0xff]  ;;  %v725_v7 = vlaneseq  ;;  %vm1579_vm3 = vcmask 1044484   ;;  %vm1581_vm4 = vcmask 1045509  }
  0xd6   : > { %s3017_s18 = sshll.u32 %s5306_s16, 4  ;;  %3573 = vmatpush3.bf16.msra.mxu0 %v3572_v10  ;;  %v3576_v17 = vpack.c.bf16 %v1128_v15, %v1127_v13  ;;  %v3578_v20 = vpack.c.bf16 %v1146_v18, %v1145_v16  ;;  %v1129_v21 = vld [vmem:[%s5234_s3 + $0x20] sm:$0xff]  ;;  %v1130_v22 = vld [vmem:[%s5234_s3 + $0x28] sm:$0xff]  ;;  %v1147_v24 = vld [vmem:[%s5234_s3 + $0xb0] sm:$0xff]  ;;  %vm1583_vm5 = vcmask 1046534   ;;  %vm4239_vm6 = vmmov 0  }
  0xd7   : > { %3575 = vmatprep.subr.bf16.mxu0 %v3574_v14  ;;  %v1148_v25 = vld [vmem:[%s5234_s3 + $0xb8] sm:$0xff]  ;;  %v3580_v26 = vpack.c.bf16 %v1130_v22, %v1129_v21  ;;  %v1131_v28 = vld [vmem:[%s5234_s3 + $0x30] sm:$0xff]  ;;  %v1149_v31 = vld [vmem:[%s5234_s3 + $0xc0] sm:$0xff]  ;;  %v4745_v10 = vshrl.u32 %v725_v7, 7  ;;  %vm1585_vm7 = vcmask 1047559   ;;  %s5290_s17 = sld [smem:[#allocation30_spill]] }
  0xd8   : > { %s4583_s0 = scalar_lea.vmem %s5289_s21, %s3017_s18  ;;  %v3582_v27 = vpack.c.bf16 %v1148_v25, %v1147_v24  ;;  %v1132_v29 = vld [vmem:[%s5234_s3 + $0x38] sm:$0xff]  ;;  %v1150_v32 = vld [vmem:[%s5234_s3 + $0xc8] sm:$0xff]  ;;  %v1133_v35 = vld [vmem:[%s5234_s3 + $0x40] sm:$0xff]  ;;  %s5291_s16 = sld [smem:[#allocation21_spill]] }
  0xd9   : > { %v4586_v2 = vld [vmem:[%s4583_s0] sm:$0xff]  ;;  %v628_v3 = vld [vmem:[%s4583_s0 + $0x8] sm:$0xff]  ;;  %v629_v6 = vld [vmem:[%s4583_s0 + $0x10] sm:$0xff]  ;;  %v3584_v33 = vpack.c.bf16 %v1132_v29, %v1131_v28  ;;  %v3586_v34 = vpack.c.bf16 %v1150_v32, %v1149_v31  ;;  %v731_v13 = vsub.s32 1, %v4745_v10  ;;  %v4755_v14 = vsub.s32 0, %v4745_v10  ;;  %s5293_s23 = sld [smem:[#allocation31_spill]] }
  0xda   : > { %911 = vperm.xlu1 %3914, %v4586_v2   ;;  %646 = vperm.xlu0 %3913, %v4586_v2   ;;  %v4632_v23 = vld [vmem:[%s4583_s0 + $0x30] sm:$0xff]  ;;  %v4649_v30 = vld [vmem:[%s4583_s0 + $0x38] sm:$0xff]  ;;  %v1134_v36 = vld [vmem:[%s5234_s3 + $0x48] sm:$0xff]  ;;  %s3014_s6 = sshll.u32 %s4349_s25, 7  ;;  %s5294_s24 = sld [smem:[#allocation32_spill]] }
  0xdb   : > { %3577 = vmatpush3.bf16.msra.mxu0 %v3576_v17  ;;  %v1151_v37 = vld [vmem:[%s5234_s3 + $0xd0] sm:$0xff]  ;;  %v1152_v38 = vld [vmem:[%s5234_s3 + $0xd8] sm:$0xff]  ;;  %v3588_v39 = vpack.c.bf16 %v1134_v36, %v1133_v35  ;;  %v1153_v44 = vld [vmem:[%s5234_s3 + $0xe0] sm:$0xff]  ;;  %s4242_s25 = smov [#allocation14]  }
  0xdc   : > { %3579 = vmatprep.subr.bf16.mxu0 %v3578_v20  ;;  %v3590_v40 = vpack.c.bf16 %v1152_v38, %v1151_v37  ;;  %v1135_v41 = vld [vmem:[%s5234_s3 + $0x50] sm:$0xff]  ;;  %v1136_v42 = vld [vmem:[%s5234_s3 + $0x58] sm:$0xff]  ;;  %v1154_v45 = vld [vmem:[%s5234_s3 + $0xe8] sm:$0xff] }
  0xdd   : > { %v630_v43 = vld [vmem:[%s4583_s0 + $0x18] sm:$0xff]  ;;  %v3592_v46 = vpack.c.bf16 %v1136_v42, %v1135_v41  ;;  %v3594_v47 = vpack.c.bf16 %v1154_v45, %v1153_v44  ;;  %v1137_v48 = vld [vmem:[%s5234_s3 + $0x60] sm:$0xff]  ;;  %v1138_v49 = vld [vmem:[%s5234_s3 + $0x68] sm:$0xff] }
  0xde   : > { %3915 = vset.pattern.permute.xlu1 %v4236_v1  ;;  %3917 = vset.pattern.permute.xlu0 %v4235_v0  ;;  %v1155_v50 = vld [vmem:[%s5234_s3 + $0xf0] sm:$0xff]  ;;  %v1156_v51 = vld [vmem:[%s5234_s3 + $0xf8] sm:$0xff]  ;;  %v631_v52 = vld [vmem:[%s4583_s0 + $0x20] sm:$0xff]  ;;  %v3596_v53 = vpack.c.bf16 %v1138_v49, %v1137_v48  ;;  %s617_s18 = sand.u32 1, %s5291_s16  }
  0xdf   : > { %651 = vperm.xlu1 %3915, %v628_v3   ;;  %915 = vperm.xlu0 %3917, %v628_v3   ;;  %v3598_v54 = vpack.c.bf16 %v1156_v51, %v1155_v50  ;;  %v1139_v55 = vld [vmem:[%s5234_s3 + $0x70] sm:$0xff]  ;;  %v1140_v56 = vld [vmem:[%s5234_s3 + $0x78] sm:$0xff]  ;;  %v635_v57 = vld [vmem:[%s4583_s0 + $0x40] sm:$0xff]  ;;  %s3002_s26 = sshll.u32 %s617_s18, 3  ;;  %s2843_s22 = scalar_lea.sflag [#allocation4], %s617_s18 }
  0xe0   : > { %3581 = vmatpush3.bf16.msra.mxu0 %v3580_v26  ;;  %v3600_v58 = vpack.c.bf16 %v1140_v56, %v1139_v55  ;;  %v636_v59 = vld [vmem:[%s4583_s0 + $0x48] sm:$0xff]  ;;  %v637_v61 = vld [vmem:[%s4583_s0 + $0x50] sm:$0xff]  ;;  %v638_v62 = vld [vmem:[%s4583_s0 + $0x58] sm:$0xff]  ;;  %s619_s15 = scalar_lea.vmem [#allocation14], %s3002_s26  ;;  %s5295_s20 = smov %s5294_s24 }
  0xe1   : > { %3583 = vmatprep.subr.bf16.mxu0 %v3582_v27  ;;  %v632_v60 = vld [vmem:[%s4583_s0 + $0x28] sm:$0xff]  ;;  %v639_v63 = vld [vmem:[%s4583_s0 + $0x60] sm:$0xff]  ;;  %v642_v4 = vld [vmem:[%s4583_s0 + $0x78] sm:$0xff]  ;;  %s2856_s19 = sshll.u32 %s619_s15, 4  ;;  %s5189_s29 = scalar_lea.hbm %s5294_s24, %s3014_s6  ;;  %s5191_s19 = int_to_ptr.vmem [resolvable:$true] %s2856_s19 }
  0xe2   : > { %v643_v15 = vld [vmem:[%s5232_s1] ss:$4 sm:$0x3]  ;;  %v3007_v21 = vld [vmem:[%s5232_s1 + $0x2] ss:$4 sm:$0x3] }
  0xe3   : > { %3916 = vset.pattern.permute.xlu1 %v4237_v19  ;;  %919 = vperm.xlu0 %3917, %v629_v6   ;;  %v4774_v22 = vrot.slane %v643_v15, %v4755_v14  ;;  %v4781_v25 = vrot.slane %v3007_v21, %v4755_v14  ;;  %v4783_v26 = vrot.slane %v3007_v21, %v731_v13  ;;  %v1049_v28 = vld [vmem:[%s5233_s2] sm:$0x3]  ;;  %v1382_v42 = vld [vmem:[#allocation2 + $0x8] sm:$0xff]  ;;  %v1384_v48 = vld [vmem:[#allocation2 + $0x18] sm:$0xff]  ;;  %s4146_s13 = scalar_lea.vmem %s5191_s19, 128 }
  0xe4   : > { %774 = vperm.xlu1 %3916, %v628_v3   ;;  %3585 = vmatpush3.bf16.msra.mxu0 %v3584_v33  ;;  %v641_v3 = vld [vmem:[%s4583_s0 + $0x70] sm:$0xff]  ;;  %v1381_v41 = vld [vmem:[#allocation2] sm:$0xff]  ;;  %p4147_p13 = scmp.ne.s32.totalorder %s5191_s19, %s4146_s13 }
  0xe5   : > { %3587 = vmatprep.subr.bf16.mxu0 %v3586_v34  ;;  %v3602_v51 = vpack.c.bf16 %v1382_v42, %v1381_v41 }
  0xe7   : > { %935 = vperm.xlu0 %3917, %v4632_v23   ;;  %3603 = vmatprep.subr.bf16.mxu1 %v3602_v51 }
  0xe8   : > { %3918 = vset.pattern.permute.xlu1 %v4236_v1  ;;  %3589 = vmatpush3.bf16.msra.mxu0 %v3588_v39 }
  0xe9   : > { %656 = vperm.xlu1 %3918, %v629_v6   ;;  %3591 = vmatprep.subr.bf16.mxu0 %v3590_v40  ;;  %v4796_v40 = vrot.slane %v1049_v28, %v731_v13 }
  0xea   : > { %3605 = vmatpush3.bf16.msra.mxu1 %v3602_v51 }
  0xeb   : > { %939 = vperm.xlu0 %3917, %v4649_v30  }
  0xec   : > { %3593 = vmatpush3.bf16.msra.mxu0 %v3592_v46 }
  0xed   : > { %3919 = vset.pattern.permute.xlu1 %v4237_v19  ;;  %3595 = vmatprep.subr.bf16.mxu0 %v3594_v47 }
  0xee   : > { %778 = vperm.xlu1 %3919, %v629_v6  }
  0xef   : > { %3929 = vset.pattern.permute.xlu0 %v4237_v19 }
  0xf0   : > { %770 = vperm.xlu0 %3929, %v4586_v2   ;;  %3597 = vmatpush3.bf16.msra.mxu0 %v3596_v53  ;;  %v640_v2 = vld [vmem:[%s4583_s0 + $0x68] sm:$0xff]  ;;  %s5292_s0 = sld [smem:[#allocation26_spill]] }
  0xf1   : > { %3599 = vmatprep.subr.bf16.mxu0 %v3598_v54 }
  0xf2   : > { %3920 = vset.pattern.permute.xlu1 %v4236_v1 }
  0xf3   : > { %661 = vperm.xlu1 %3920, %v630_v43  }
  0xf4   : > { %782 = vperm.xlu0 %3929, %v630_v43   ;;  %3601 = vmatpush3.bf16.msra.mxu0 %v3600_v58  ;;  %v1385_v58 = vld [vmem:[#allocation2 + $0x20] sm:$0xff] }
  0xf6   : > { %p5296_p1 = scmp.ne.s32.totalorder %s5292_s0, 0 }
  0xf7   : > { %3921 = vset.pattern.permute.xlu1 %v4235_v0 }
  0xf8   : > { %923 = vperm.xlu1 %3921, %v630_v43   ;;  %786 = vperm.xlu0 %3929, %v631_v52   ;;  %v1383_v43 = vld [vmem:[#allocation2 + $0x10] sm:$0xff]  ;;  %p4148_p6 = pnand %p4147_p13, %p5296_p1 }
  0xfa   : > { %p4149_p9 = pneg %p4148_p6 }
  0xfc   : > { %3922 = vset.pattern.permute.xlu1 %v4236_v1  ;;  %802 = vperm.xlu0 %3929, %v635_v57  }
  0xfd   : > { %666 = vperm.xlu1 %3922, %v631_v52  }
 0x100   : > { %806 = vperm.xlu0 %3929, %v636_v59  }
 0x101   : > { %3923 = vset.pattern.permute.xlu1 %v4235_v0 }
 0x102   : > { %927 = vperm.xlu1 %3923, %v631_v52   ;;  %v3606_v52 = vpack.c.bf16 %v1384_v48, %v1383_v43 }
 0x104   : > { %3933 = vset.pattern.permute.xlu0 %v4236_v1  ;;  %3607 = vmatprep.subr.bf16.mxu1 %v3606_v52 }
 0x105   : > { %671 = vperm.xlu0 %3933, %v632_v60   ;;  %3609 = vmatpush3.bf16.msra.mxu1 %v3606_v52 }
 0x106   : > { %3924 = vset.pattern.permute.xlu1 %v4237_v19 }
 0x107   : > { %790 = vperm.xlu1 %3924, %v632_v60  }
 0x109   : > { %676 = vperm.xlu0 %3933, %v4632_v23  }
 0x10b   : > { %3925 = vset.pattern.permute.xlu1 %v4235_v0 }
 0x10c   : > { %931 = vperm.xlu1 %3925, %v632_v60  }
 0x10d   : > { %696 = vperm.xlu0 %3933, %v637_v61  }
 0x110   : > { %3926 = vset.pattern.permute.xlu1 %v4237_v19 }
 0x111   : > { %794 = vperm.xlu1 %3926, %v4632_v23   ;;  %701 = vperm.xlu0 %3933, %v638_v62  }
 0x115   : > { %3927 = vset.pattern.permute.xlu1 %v4236_v1  ;;  %3938 = vset.pattern.permute.xlu0 %v4235_v0 }
 0x116   : > { %681 = vperm.xlu1 %3927, %v4649_v30   ;;  %955 = vperm.xlu0 %3938, %v638_v62  }
 0x11a   : > { %3928 = vset.pattern.permute.xlu1 %v4237_v19  ;;  %959 = vperm.xlu0 %3938, %v639_v63  }
 0x11b   : > { %798 = vperm.xlu1 %3928, %v4649_v30  }
 0x11e   : > { %3942 = vset.pattern.permute.xlu0 %v4237_v19 }
 0x11f   : > { %3930 = vset.pattern.permute.xlu1 %v4236_v1  ;;  %822 = vperm.xlu0 %3942, %v640_v2  }
 0x120   : > { %686 = vperm.xlu1 %3930, %v635_v57  }
 0x123   : > { %826 = vperm.xlu0 %3942, %v641_v3  }
 0x124   : > { %3931 = vset.pattern.permute.xlu1 %v4235_v0 }
 0x125   : > { %943 = vperm.xlu1 %3931, %v635_v57  }
 0x127   : > { %3946 = vset.pattern.permute.xlu0 %v4236_v1 }
 0x128   : > { %721 = vperm.xlu0 %3946, %v642_v4  }
 0x129   : > { %3932 = vset.pattern.permute.xlu1 %v4236_v1 }
 0x12a   : > { %691 = vperm.xlu1 %3932, %v636_v59  }
 0x12c   : > { %3949 = vset.pattern.permute.xlu0 %v4235_v0 }
 0x12e   : > { %3934 = vset.pattern.permute.xlu1 %v4235_v0 }
 0x12f   : > { %947 = vperm.xlu1 %3934, %v636_v59   ;;  %v1386_v59 = vld [vmem:[#allocation2 + $0x28] sm:$0xff] }
 0x133   : > { %3935 = vset.pattern.permute.xlu1 %v4237_v19 }
 0x134   : > { %810 = vperm.xlu1 %3935, %v637_v61  }
 0x138   : > { %3936 = vset.pattern.permute.xlu1 %v4235_v0 }
 0x139   : > { %951 = vperm.xlu1 %3936, %v637_v61  }
 0x13d   : > { %3937 = vset.pattern.permute.xlu1 %v4237_v19 }
 0x13e   : > { %814 = vperm.xlu1 %3937, %v638_v62  }
 0x142   : > { %3939 = vset.pattern.permute.xlu1 %v4236_v1 }
 0x143   : > { %706 = vperm.xlu1 %3939, %v639_v63  }
 0x147   : > { %3940 = vset.pattern.permute.xlu1 %v4237_v19 }
 0x148   : > { %818 = vperm.xlu1 %3940, %v639_v63   ;;  %v4807_v63 = vrot.slane %v1049_v28, %v4755_v14 }
 0x14c   : > { %3941 = vset.pattern.permute.xlu1 %v4236_v1 }
 0x14d   : > { %711 = vperm.xlu1 %3941, %v640_v2  }
 0x151   : > { %3943 = vset.pattern.permute.xlu1 %v4235_v0 }
 0x152   : > { %963 = vperm.xlu1 %3943, %v640_v2  }
 0x156   : > { %3944 = vset.pattern.permute.xlu1 %v4236_v1  ;;  %v3006_v1 = vld [vmem:[%s5232_s1 + $0x1] ss:$4 sm:$0x3] }
 0x157   : > { %716 = vperm.xlu1 %3944, %v641_v3   ;;  %v4761_v16 = vrot.slane %v3006_v1, %v731_v13  ;;  %v4766_v18 = vrot.slane %v3006_v1, %v4755_v14 }
 0x159   : > { %v912_v5 = vpop.permute.xlu1 %911  ;;  %v647_v6 = vpop.permute.xlu0 %646 }
 0x15a   : > { %v735_v29 = vmul.f32 %v4774_v22, %v647_v6  ;;  %v985_v44 = vmul.f32 %v4781_v25, %v912_v5  ;;  %v986_v53 = vmul.f32 %v4783_v26, %v912_v5 }
 0x15b   : > { %3945 = vset.pattern.permute.xlu1 %v4235_v0 }
 0x15c   : > { %967 = vperm.xlu1 %3945, %v641_v3  }
 0x15e   : > { %v652_v8 = vpop.permute.xlu1 %651  ;;  %v916_v9 = vpop.permute.xlu0 %915 }
 0x15f   : > { %v737_v30 = vmul.f32 %v4774_v22, %v652_v8  ;;  %v988_v33 = vmul.f32 %v4783_v26, %v916_v9  ;;  %v987_v36 = vmul.f32 %v4781_v25, %v916_v9  ;;  %v3610_v9 = vpack.c.bf16 %v1386_v59, %v1385_v58 }
 0x160   : > { %3947 = vset.pattern.permute.xlu1 %v4237_v19  ;;  %v4768_v19 = vrot.slane %v643_v15, %v731_v13 }
 0x161   : > { %830 = vperm.xlu1 %3947, %v642_v4   ;;  %3611 = vmatprep.subr.bf16.mxu1 %v3610_v9 }
 0x162   : > { %v4748_v11 = vpop.permute.xlu0 %919  ;;  %v738_v27 = vmul.f32 %v4768_v19, %v652_v8  ;;  %v736_v32 = vmul.f32 %v4768_v19, %v647_v6  ;;  %3613 = vmatpush3.bf16.msra.mxu1 %v3610_v9 }
 0x163   : > { %v775_v12 = vpop.permute.xlu1 %774  ;;  %v990_v45 = vmul.f32 %v4783_v26, %v4748_v11  ;;  %v989_v6 = vmul.f32 %v4781_v25, %v4748_v11 }
 0x164   : > { %v846_v24 = vmul.f32 %v4766_v18, %v775_v12 }
 0x165   : > { %3948 = vset.pattern.permute.xlu1 %v4235_v0  ;;  %v847_v0 = vmul.f32 %v4761_v16, %v775_v12 }
 0x166   : > { %971 = vperm.xlu1 %3948, %v642_v4   ;;  %v4763_v17 = vpop.permute.xlu0 %935  ;;  %v878_v37 = vadd.f32 %v846_v24, %v737_v30  ;;  %v1387_v24 = vld [vmem:[#allocation2 + $0x30] sm:$0xff] }
 0x167   : > { %v879_v34 = vadd.f32 %v847_v0, %v738_v27  ;;  %v1388_v27 = vld [vmem:[#allocation2 + $0x38] sm:$0xff] }
 0x168   : > { %v657_v20 = vpop.permute.xlu1 %656  ;;  %v1019_v60 = vadd.f32 %v987_v36, %v878_v37  ;;  %v1390_v36 = vld [vmem:[#allocation2 + $0x48] sm:$0xff] }
 0x169   : > { %v740_v38 = vmul.f32 %v4768_v19, %v657_v20  ;;  %v1020_v54 = vadd.f32 %v988_v33, %v879_v34  ;;  %v739_v61 = vmul.f32 %v4774_v22, %v657_v20 }
 0x16a   : > { %v4777_v23 = vpop.permute.xlu0 %939  ;;  %v1063_v30 = vadd.f32 %v4807_v63, %v1019_v60 }
 0x16b   : > { %v1064_v13 = vadd.f32 %v4796_v40, %v1020_v54 }
 0x16d   : > { %v779_v31 = vpop.permute.xlu1 %778 }
 0x16e   : > { %v849_v35 = vmul.f32 %v4761_v16, %v779_v31  ;;  %v848_v49 = vmul.f32 %v4766_v18, %v779_v31 }
 0x16f   : > { %v771_v39 = vpop.permute.xlu0 %770 }
 0x170   : > { %v844_v46 = vmul.f32 %v4766_v18, %v771_v39  ;;  %v845_v47 = vmul.f32 %v4761_v16, %v771_v39  ;;  %v881_v50 = vadd.f32 %v849_v35, %v740_v38  ;;  %v880_v7 = vadd.f32 %v848_v49, %v739_v61  ;;  %v1389_v35 = vld [vmem:[#allocation2 + $0x40] sm:$0xff] }
 0x171   : > { %v1096_v38 = vmax.f32 %v1064_v13, 0.0  ;;  %v3614_v39 = vpack.c.bf16 %v1388_v27, %v1387_v24 }
 0x172   : > { %v876_v55 = vadd.f32 %v844_v46, %v735_v29  ;;  %v877_v56 = vadd.f32 %v845_v47, %v736_v32  ;;  %v662_v57 = vpop.permute.xlu1 %661  ;;  %v1022_v8 = vadd.f32 %v990_v45, %v881_v50  ;;  %v1021_v31 = vadd.f32 %v989_v6, %v880_v7 }
 0x173   : > { %v783_v62 = vpop.permute.xlu0 %782  ;;  %v742_v3 = vmul.f32 %v4768_v19, %v662_v57  ;;  %v741_v15 = vmul.f32 %v4774_v22, %v662_v57  ;;  %v3618_v45 = vpack.c.bf16 %v1390_v36, %v1389_v35  ;;  %3615 = vmatprep.subr.bf16.mxu1 %v3614_v39  ;;  %v997_v36 = vmul.f32 %v4781_v25, %v4763_v17 }
 0x174   : > { %v1017_v2 = vadd.f32 %v985_v44, %v876_v55  ;;  %v851_v4 = vmul.f32 %v4761_v16, %v783_v62  ;;  %v1018_v5 = vadd.f32 %v986_v53, %v877_v56  ;;  %v850_v20 = vmul.f32 %v4766_v18, %v783_v62  ;;  %3617 = vmatpush3.bf16.msra.mxu1 %v3614_v39 }
 0x175   : > { %v1066_v34 = vadd.f32 %v4796_v40, %v1022_v8  ;;  %v1095_v44 = vmax.f32 %v1063_v30, 0.0  ;;  %v1065_v48 = vadd.f32 %v4807_v63, %v1021_v31  ;;  %3619 = vmatprep.subr.bf16.mxu1 %v3618_v45 }
 0x176   : > { %v1062_v1 = vadd.f32 %v4796_v40, %v1018_v5  ;;  %v1061_v12 = vadd.f32 %v4807_v63, %v1017_v2  ;;  %v883_v28 = vadd.f32 %v851_v4, %v742_v3  ;;  %v882_v41 = vadd.f32 %v850_v20, %v741_v15 }
 0x177   : > { %v924_v21 = vpop.permute.xlu1 %923  ;;  %v787_v0 = vpop.permute.xlu0 %786  ;;  %v1098_v47 = vmax.f32 %v1066_v34, 0.0  ;;  %v1097_v56 = vmax.f32 %v1065_v48, 0.0 }
 0x178   : > { %v992_v11 = vmul.f32 %v4783_v26, %v924_v21  ;;  %v1094_v29 = vmax.f32 %v1062_v1, 0.0  ;;  %v991_v32 = vmul.f32 %v4781_v25, %v924_v21  ;;  %v1093_v33 = vmax.f32 %v1061_v12, 0.0  ;;  %3621 = vmatpush3.bf16.msra.mxu1 %v3618_v45 }
 0x179   : > { %v852_v50 = vmul.f32 %v4766_v18, %v787_v0  ;;  %v853_v51 = vmul.f32 %v4761_v16, %v787_v0 }
 0x17a   : > { %v1024_v37 = vadd.f32 %v992_v11, %v883_v28  ;;  %1228 = vmatprep.mubr.f32.mxu0 %v1094_v29  ;;  %v1023_v46 = vadd.f32 %v991_v32, %v882_v41 }
 0x17b   : > { %1229 = vmatmul.mubr.f32.vlgmr.msra.gmra.mrb[0].mxu0 %v1093_v33  ;;  %v4822_v42 = vpop.permute.xlu0 %802 }
 0x17c   : > { %v667_v43 = vpop.permute.xlu1 %666  ;;  %1233 = vmatprep.mubr.f32.mxu0 %v1096_v38  ;;  %v1068_v49 = vadd.f32 %v4796_v40, %v1024_v37  ;;  %v1067_v58 = vadd.f32 %v4807_v63, %v1023_v46  ;;  %v998_v37 = vmul.f32 %v4783_v26, %v4763_v17 }
 0x17d   : > { %v743_v52 = vmul.f32 %v4774_v22, %v667_v43  ;;  %v744_v53 = vmul.f32 %v4768_v19, %v667_v43 }
 0x17e   : > { %v1100_v57 = vmax.f32 %v1068_v49, 0.0  ;;  %v1099_v5 = vmax.f32 %v1067_v58, 0.0  ;;  %v999_v58 = vmul.f32 %v4781_v25, %v4777_v23 }
 0x17f   : > { %1234 = vmatmul.mubr.f32.gmra.mrb[2].mxu0 %v1095_v44  ;;  %v4830_v54 = vpop.permute.xlu0 %806  ;;  %v884_v59 = vadd.f32 %v852_v50, %v743_v52  ;;  %v885_v60 = vadd.f32 %v853_v51, %v744_v53 }
 0x180   : > { %1238 = vmatprep.mubr.f32.mxu0 %v1098_v47 }
 0x181   : > { %v928_v55 = vpop.permute.xlu1 %927 }
 0x182   : > { %v993_v61 = vmul.f32 %v4781_v25, %v928_v55  ;;  %v994_v62 = vmul.f32 %v4783_v26, %v928_v55 }
 0x183   : > { %1239 = vmatmul.mubr.f32.gmra.mrb[4].mxu0 %v1097_v56 }
 0x184   : > { %v1025_v2 = vadd.f32 %v993_v61, %v884_v59  ;;  %v1026_v3 = vadd.f32 %v994_v62, %v885_v60  ;;  %1243 = vmatprep.mubr.f32.mxu0 %v1100_v57  ;;  %v672_v4 = vpop.permute.xlu0 %671  ;;  %v1000_v59 = vmul.f32 %v4783_v26, %v4777_v23 }
 0x185   : > { %v745_v9 = vmul.f32 %v4774_v22, %v672_v4  ;;  %v746_v1 = vmul.f32 %v4768_v19, %v672_v4  ;;  %v860_v4 = vmul.f32 %v4766_v18, %v4822_v42 }
 0x186   : > { %v791_v6 = vpop.permute.xlu1 %790  ;;  %v1070_v7 = vadd.f32 %v4796_v40, %v1026_v3  ;;  %v1069_v8 = vadd.f32 %v4807_v63, %v1025_v2 }
 0x187   : > { %1244 = vmatmul.mubr.f32.gmra.mrb[6].mxu0 %v1099_v5  ;;  %v854_v12 = vmul.f32 %v4766_v18, %v791_v6  ;;  %v855_v13 = vmul.f32 %v4761_v16, %v791_v6  ;;  %v861_v5 = vmul.f32 %v4761_v16, %v4822_v42 }
 0x188   : > { %v1102_v15 = vmax.f32 %v1070_v7, 0.0  ;;  %v1101_v20 = vmax.f32 %v1069_v8, 0.0  ;;  %v677_v11 = vpop.permute.xlu0 %676 }
 0x189   : > { %v886_v0 = vadd.f32 %v854_v12, %v745_v9  ;;  %v887_v24 = vadd.f32 %v855_v13, %v746_v1  ;;  %v747_v31 = vmul.f32 %v4774_v22, %v677_v11  ;;  %v748_v32 = vmul.f32 %v4768_v19, %v677_v11 }
 0x18a   : > { %1248 = vmatprep.mubr.f32.mxu0 %v1102_v15 }
 0x18b   : > { %v932_v21 = vpop.permute.xlu1 %931  ;;  %1249 = vmatmul.mubr.f32.gmra.mrb[8].mxu0 %v1101_v20 }
 0x18c   : > { %v995_v27 = vmul.f32 %v4781_v25, %v932_v21  ;;  %v996_v28 = vmul.f32 %v4783_v26, %v932_v21 }
 0x18e   : > { %v1027_v29 = vadd.f32 %v995_v27, %v886_v0  ;;  %v1028_v30 = vadd.f32 %v996_v28, %v887_v24 }
 0x190   : > { %v795_v33 = vpop.permute.xlu1 %794  ;;  %v1072_v34 = vadd.f32 %v4796_v40, %v1028_v30  ;;  %v1071_v35 = vadd.f32 %v4807_v63, %v1027_v29 }
 0x191   : > { %v856_v38 = vmul.f32 %v4766_v18, %v795_v33  ;;  %v857_v39 = vmul.f32 %v4761_v16, %v795_v33  ;;  %v863_v33 = vmul.f32 %v4761_v16, %v4830_v54 }
 0x192   : > { %v1104_v41 = vmax.f32 %v1072_v34, 0.0  ;;  %v1103_v43 = vmax.f32 %v1071_v35, 0.0 }
 0x193   : > { %v888_v44 = vadd.f32 %v856_v38, %v747_v31  ;;  %v889_v45 = vadd.f32 %v857_v39, %v748_v32  ;;  %v862_v32 = vmul.f32 %v4766_v18, %v4830_v54 }
 0x194   : > { %1253 = vmatprep.mubr.f32.mxu0 %v1104_v41 }
 0x195   : > { %v1029_v46 = vadd.f32 %v997_v36, %v888_v44  ;;  %v1030_v47 = vadd.f32 %v998_v37, %v889_v45  ;;  %v682_v48 = vpop.permute.xlu1 %681  ;;  %1254 = vmatmul.mubr.f32.gmra.mrb[10].mxu0 %v1103_v43  ;;  %v697_v43 = vpop.permute.xlu0 %696 }
 0x196   : > { %v749_v53 = vmul.f32 %v4774_v22, %v682_v48  ;;  %v750_v55 = vmul.f32 %v4768_v19, %v682_v48  ;;  %v756_v54 = vmul.f32 %v4768_v19, %v697_v43 }
 0x197   : > { %v1074_v49 = vadd.f32 %v4796_v40, %v1030_v47  ;;  %v1073_v50 = vadd.f32 %v4807_v63, %v1029_v46  ;;  %v755_v47 = vmul.f32 %v4774_v22, %v697_v43  ;;  %v1392_v43 = vld [vmem:[#allocation2 + $0x58] sm:$0xff] }
 0x199   : > { %v1106_v51 = vmax.f32 %v1074_v49, 0.0  ;;  %v1105_v52 = vmax.f32 %v1073_v50, 0.0 }
 0x19a   : > { %v799_v17 = vpop.permute.xlu1 %798 }
 0x19b   : > { %v858_v56 = vmul.f32 %v4766_v18, %v799_v17  ;;  %v859_v57 = vmul.f32 %v4761_v16, %v799_v17  ;;  %1258 = vmatprep.mubr.f32.mxu0 %v1106_v51 }
 0x19c   : > { %1259 = vmatmul.mubr.f32.gmra.mrb[12].mxu0 %v1105_v52  ;;  %v702_v52 = vpop.permute.xlu0 %701 }
 0x19d   : > { %v890_v60 = vadd.f32 %v858_v56, %v749_v53  ;;  %v891_v61 = vadd.f32 %v859_v57, %v750_v55 }
 0x19f   : > { %v1031_v62 = vadd.f32 %v999_v58, %v890_v60  ;;  %v1032_v2 = vadd.f32 %v1000_v59, %v891_v61  ;;  %v687_v3 = vpop.permute.xlu1 %686  ;;  %v757_v61 = vmul.f32 %v4774_v22, %v702_v52 }
 0x1a0   : > { %v751_v6 = vmul.f32 %v4774_v22, %v687_v3  ;;  %v752_v7 = vmul.f32 %v4768_v19, %v687_v3  ;;  %v956_v60 = vpop.permute.xlu0 %955 }
 0x1a1   : > { %v1076_v8 = vadd.f32 %v4796_v40, %v1032_v2  ;;  %v1075_v9 = vadd.f32 %v4807_v63, %v1031_v62  ;;  %v758_v62 = vmul.f32 %v4768_v19, %v702_v52  ;;  %v1393_v52 = vld [vmem:[#allocation2 + $0x60] sm:$0xff] }
 0x1a2   : > { %v892_v13 = vadd.f32 %v860_v4, %v751_v6  ;;  %v893_v15 = vadd.f32 %v861_v5, %v752_v7  ;;  %v1007_v7 = vmul.f32 %v4781_v25, %v956_v60 }
 0x1a3   : > { %v1108_v23 = vmax.f32 %v1076_v8, 0.0  ;;  %v1107_v1 = vmax.f32 %v1075_v9, 0.0  ;;  %v1008_v8 = vmul.f32 %v4783_v26, %v956_v60 }
 0x1a4   : > { %v944_v12 = vpop.permute.xlu1 %943 }
 0x1a5   : > { %v1001_v20 = vmul.f32 %v4781_v25, %v944_v12  ;;  %v1002_v21 = vmul.f32 %v4783_v26, %v944_v12  ;;  %1263 = vmatprep.mubr.f32.mxu0 %v1108_v23 }
 0x1a6   : > { %1264 = vmatmul.mubr.f32.gmra.mrb[14].mxu0 %v1107_v1 }
 0x1a7   : > { %v1033_v42 = vadd.f32 %v1001_v20, %v892_v13  ;;  %v1034_v0 = vadd.f32 %v1002_v21, %v893_v15 }
 0x1a9   : > { %v692_v24 = vpop.permute.xlu1 %691  ;;  %v1078_v27 = vadd.f32 %v4796_v40, %v1034_v0  ;;  %v1077_v28 = vadd.f32 %v4807_v63, %v1033_v42  ;;  %v960_v42 = vpop.permute.xlu0 %959 }
 0x1aa   : > { %v753_v11 = vmul.f32 %v4774_v22, %v692_v24  ;;  %v754_v29 = vmul.f32 %v4768_v19, %v692_v24 }
 0x1ab   : > { %v1110_v30 = vmax.f32 %v1078_v27, 0.0  ;;  %v1109_v31 = vmax.f32 %v1077_v28, 0.0 }
 0x1ac   : > { %v894_v35 = vadd.f32 %v862_v32, %v753_v11  ;;  %v895_v36 = vadd.f32 %v863_v33, %v754_v29  ;;  %v1009_v11 = vmul.f32 %v4781_v25, %v960_v42  ;;  %v1010_v29 = vmul.f32 %v4783_v26, %v960_v42 }
 0x1ad   : > { %1268 = vmatprep.mubr.f32.mxu0 %v1110_v30 }
 0x1ae   : > { %v948_v34 = vpop.permute.xlu1 %947  ;;  %1269 = vmatmul.mubr.f32.gmra.mrb[16].mxu0 %v1109_v31 }
 0x1af   : > { %v1003_v37 = vmul.f32 %v4781_v25, %v948_v34  ;;  %v1004_v38 = vmul.f32 %v4783_v26, %v948_v34 }
 0x1b1   : > { %v1035_v39 = vadd.f32 %v1003_v37, %v894_v35  ;;  %v1036_v41 = vadd.f32 %v1004_v38, %v895_v36  ;;  %v823_v36 = vpop.permute.xlu0 %822 }
 0x1b3   : > { %v811_v44 = vpop.permute.xlu1 %810  ;;  %v1080_v45 = vadd.f32 %v4796_v40, %v1036_v41  ;;  %v1079_v46 = vadd.f32 %v4807_v63, %v1035_v39  ;;  %v1391_v41 = vld [vmem:[#allocation2 + $0x50] sm:$0xff] }
 0x1b4   : > { %v864_v48 = vmul.f32 %v4766_v18, %v811_v44  ;;  %v865_v49 = vmul.f32 %v4761_v16, %v811_v44  ;;  %v870_v44 = vmul.f32 %v4766_v18, %v823_v36 }
 0x1b5   : > { %v1112_v50 = vmax.f32 %v1080_v45, 0.0  ;;  %v1111_v51 = vmax.f32 %v1079_v46, 0.0  ;;  %v871_v45 = vmul.f32 %v4761_v16, %v823_v36  ;;  %v3622_v46 = vpack.c.bf16 %v1392_v43, %v1391_v41 }
 0x1b6   : > { %v896_v53 = vadd.f32 %v864_v48, %v755_v47  ;;  %v897_v55 = vadd.f32 %v865_v49, %v756_v54 }
 0x1b7   : > { %1273 = vmatprep.mubr.f32.mxu0 %v1112_v50  ;;  %3623 = vmatprep.subr.bf16.mxu1 %v3622_v46 }
 0x1b8   : > { %v952_v17 = vpop.permute.xlu1 %951  ;;  %1274 = vmatmul.mubr.f32.gmra.mrb[18].mxu0 %v1111_v51  ;;  %3625 = vmatpush3.bf16.msra.mxu1 %v3622_v46 }
 0x1b9   : > { %v1005_v56 = vmul.f32 %v4781_v25, %v952_v17  ;;  %v1006_v57 = vmul.f32 %v4783_v26, %v952_v17  ;;  %v1394_v17 = vld [vmem:[#allocation2 + $0x68] sm:$0xff] }
 0x1bb   : > { %v1037_v58 = vadd.f32 %v1005_v56, %v896_v53  ;;  %v1038_v59 = vadd.f32 %v1006_v57, %v897_v55  ;;  %v3626_v55 = vpack.c.bf16 %v1394_v17, %v1393_v52  ;;  %v1543_v52 = vld [vmem:[#allocation5 + $0x8] sm:$0xff] }
 0x1bd   : > { %v815_v2 = vpop.permute.xlu1 %814  ;;  %v1082_v3 = vadd.f32 %v4796_v40, %v1038_v59  ;;  %v1081_v4 = vadd.f32 %v4807_v63, %v1037_v58  ;;  %3627 = vmatprep.subr.bf16.mxu1 %v3626_v55 }
 0x1be   : > { %v866_v5 = vmul.f32 %v4766_v18, %v815_v2  ;;  %v867_v6 = vmul.f32 %v4761_v16, %v815_v2  ;;  %3629 = vmatpush3.bf16.msra.mxu1 %v3626_v55  ;;  %v1395_v2 = vld [vmem:[#allocation2 + $0x70] sm:$0xff] }
 0x1bf   : > { %v1114_v9 = vmax.f32 %v1082_v3, 0.0  ;;  %v1113_v23 = vmax.f32 %v1081_v4, 0.0  ;;  %v1396_v3 = vld [vmem:[#allocation2 + $0x78] sm:$0xff] }
 0x1c0   : > { %v898_v1 = vadd.f32 %v866_v5, %v757_v61  ;;  %v899_v12 = vadd.f32 %v867_v6, %v758_v62  ;;  %v827_v62 = vpop.permute.xlu0 %826  ;;  %v3630_v4 = vpack.c.bf16 %v1396_v3, %v1395_v2 }
 0x1c1   : > { %1278 = vmatprep.mubr.f32.mxu0 %v1114_v9  ;;  %v873_v9 = vmul.f32 %v4761_v16, %v827_v62 }
 0x1c2   : > { %v1039_v13 = vadd.f32 %v1007_v7, %v898_v1  ;;  %v1040_v15 = vadd.f32 %v1008_v8, %v899_v12  ;;  %v707_v20 = vpop.permute.xlu1 %706  ;;  %1279 = vmatmul.mubr.f32.gmra.mrb[20].mxu0 %v1113_v23  ;;  %v872_v8 = vmul.f32 %v4766_v18, %v827_v62  ;;  %3631 = vmatprep.subr.bf16.mxu1 %v3630_v4 }
 0x1c3   : > { %v759_v30 = vmul.f32 %v4774_v22, %v707_v20  ;;  %v760_v31 = vmul.f32 %v4768_v19, %v707_v20  ;;  %3633 = vmatpush3.bf16.msra.mxu1 %v3630_v4 }
 0x1c4   : > { %v1084_v21 = vadd.f32 %v4796_v40, %v1040_v15  ;;  %v1083_v0 = vadd.f32 %v4807_v63, %v1039_v13 }
 0x1c6   : > { %v1116_v24 = vmax.f32 %v1084_v21, 0.0  ;;  %v1115_v27 = vmax.f32 %v1083_v0, 0.0 }
 0x1c7   : > { %v819_v28 = vpop.permute.xlu1 %818 }
 0x1c8   : > { %v868_v32 = vmul.f32 %v4766_v18, %v819_v28  ;;  %v869_v33 = vmul.f32 %v4761_v16, %v819_v28  ;;  %1283 = vmatprep.mubr.f32.mxu0 %v1116_v24  ;;  %v722_v28 = vpop.permute.xlu0 %721 }
 0x1c9   : > { %1284 = vmatmul.mubr.f32.gmra.mrb[22].mxu0 %v1115_v27 }
 0x1ca   : > { %v900_v34 = vadd.f32 %v868_v32, %v759_v30  ;;  %v901_v35 = vadd.f32 %v869_v33, %v760_v31  ;;  %v765_v31 = vmul.f32 %v4774_v22, %v722_v28  ;;  %v766_v32 = vmul.f32 %v4768_v19, %v722_v28 }
 0x1cc   : > { %v1041_v37 = vadd.f32 %v1009_v11, %v900_v34  ;;  %v1042_v38 = vadd.f32 %v1010_v29, %v901_v35  ;;  %v712_v39 = vpop.permute.xlu1 %711 }
 0x1cd   : > { %v761_v47 = vmul.f32 %v4774_v22, %v712_v39  ;;  %v762_v54 = vmul.f32 %v4768_v19, %v712_v39 }
 0x1ce   : > { %v1086_v48 = vadd.f32 %v4796_v40, %v1042_v38  ;;  %v1085_v49 = vadd.f32 %v4807_v63, %v1041_v37 }
 0x1cf   : > { %v902_v56 = vadd.f32 %v870_v44, %v761_v47  ;;  %v903_v57 = vadd.f32 %v871_v45, %v762_v54 }
 0x1d0   : > { %v1118_v50 = vmax.f32 %v1086_v48, 0.0  ;;  %v1117_v51 = vmax.f32 %v1085_v49, 0.0 }
 0x1d1   : > { %v964_v53 = vpop.permute.xlu1 %963 }
 0x1d2   : > { %v1011_v58 = vmul.f32 %v4781_v25, %v964_v53  ;;  %v1012_v59 = vmul.f32 %v4783_v26, %v964_v53  ;;  %1288 = vmatprep.mubr.f32.mxu0 %v1118_v50 }
 0x1d3   : > { %1289 = vmatmul.mubr.f32.gmra.mrb[24].mxu0 %v1117_v51  ;;  %v1542_v51 = vld [vmem:[#allocation5] sm:$0xff] }
 0x1d4   : > { %v1043_v60 = vadd.f32 %v1011_v58, %v902_v56  ;;  %v1044_v61 = vadd.f32 %v1012_v59, %v903_v57  ;;  %v3635_v56 = vpack.c.bf16 %v1543_v52, %v1542_v51  ;;  %v1544_v59 = vld [vmem:[#allocation5 + $0x10] sm:$0xff] }
 0x1d5   : > { %v1556_v52 = vld [vmem:[#allocation5 + $0x70] sm:$0xff] }
 0x1d6   : > { %v717_v5 = vpop.permute.xlu1 %716  ;;  %v1088_v6 = vadd.f32 %v4796_v40, %v1044_v61  ;;  %v1087_v7 = vadd.f32 %v4807_v63, %v1043_v60  ;;  %v1545_v60 = vld [vmem:[#allocation5 + $0x18] sm:$0xff] }
 0x1d7   : > { %v763_v23 = vmul.f32 %v4774_v22, %v717_v5  ;;  %v764_v1 = vmul.f32 %v4768_v19, %v717_v5  ;;  %v3638_v4 = vpack.c.bf16 %v1545_v60, %v1544_v59 }
 0x1d8   : > { %v1120_v12 = vmax.f32 %v1088_v6, 0.0  ;;  %v1119_v13 = vmax.f32 %v1087_v7, 0.0 }
 0x1d9   : > { %v904_v20 = vadd.f32 %v872_v8, %v763_v23  ;;  %v905_v21 = vadd.f32 %v873_v9, %v764_v1  ;;  %v1546_v8 = vld [vmem:[#allocation5 + $0x20] sm:$0xff]  ;;  %v1547_v9 = vld [vmem:[#allocation5 + $0x28] sm:$0xff] }
 0x1da   : > { %1293 = vmatprep.mubr.f32.mxu0 %v1120_v12 }
 0x1db   : > { %v968_v15 = vpop.permute.xlu1 %967  ;;  %1294 = vmatmul.mubr.f32.gmra.mrb[26].mxu0 %v1119_v13 }
 0x1dc   : > { %v1013_v42 = vmul.f32 %v4781_v25, %v968_v15  ;;  %v1014_v0 = vmul.f32 %v4783_v26, %v968_v15  ;;  %v3641_v15 = vpack.c.bf16 %v1547_v9, %v1546_v8 }
 0x1de   : > { %v1045_v24 = vadd.f32 %v1013_v42, %v904_v20  ;;  %v1046_v27 = vadd.f32 %v1014_v0, %v905_v21  ;;  %v1548_v42 = vld [vmem:[#allocation5 + $0x30] sm:$0xff]  ;;  %v1549_v0 = vld [vmem:[#allocation5 + $0x38] sm:$0xff] }
 0x1e0   : > { %v831_v11 = vpop.permute.xlu1 %830  ;;  %v1090_v29 = vadd.f32 %v4796_v40, %v1046_v27  ;;  %v1089_v30 = vadd.f32 %v4807_v63, %v1045_v24 }
 0x1e1   : > { %v874_v33 = vmul.f32 %v4766_v18, %v831_v11  ;;  %v875_v34 = vmul.f32 %v4761_v16, %v831_v11  ;;  %v4238_v16 = vmov 0.0|0.0   ;;  %v3644_v11 = vpack.c.bf16 %v1549_v0, %v1548_v42 }
 0x1e2   : > { %v1122_v35 = vmax.f32 %v1090_v29, 0.0  ;;  %v1121_v36 = vmax.f32 %v1089_v30, 0.0  ;;  %3634 = vmatprep.subr.bf16.mxu1 %v4238_v16 }
 0x1e3   : > { %v906_v38 = vadd.f32 %v874_v33, %v765_v31  ;;  %v907_v39 = vadd.f32 %v875_v34, %v766_v32  ;;  %v1550_v31 = vld [vmem:[#allocation5 + $0x40] sm:$0xff]  ;;  %v1551_v32 = vld [vmem:[#allocation5 + $0x48] sm:$0xff] }
 0x1e4   : > { %1298 = vmatprep.mubr.f32.mxu0 %v1122_v35  ;;  %v3647_v35 = vpack.c.bf16 %v1551_v32, %v1550_v31 }
 0x1e5   : > { %v972_v37 = vpop.permute.xlu1 %971  ;;  %1299 = vmatmul.mubr.f32.gmra.mrb[28].mxu0 %v1121_v36 }
 0x1e6   : > { %v1015_v41 = vmul.f32 %v4781_v25, %v972_v37  ;;  %v1016_v43 = vmul.f32 %v4783_v26, %v972_v37  ;;  %v4937_v25 = vld [vmem:[%s5235_s4] ss:$0 sm:$0xff] }
 0x1e8   : > { %v1047_v44 = vadd.f32 %v1015_v41, %v906_v38  ;;  %v1048_v45 = vadd.f32 %v1016_v43, %v907_v39  ;;  %v1552_v38 = vld [vmem:[#allocation5 + $0x50] sm:$0xff]  ;;  %v1553_v39 = vld [vmem:[#allocation5 + $0x58] sm:$0xff] }
 0x1ea   : > { %v1092_v22 = vadd.f32 %v4796_v40, %v1048_v45  ;;  %v1091_v19 = vadd.f32 %v4807_v63, %v1047_v44 }
 0x1ec   : > { %v1124_v18 = vmax.f32 %v1092_v22, 0.0  ;;  %v1123_v46 = vmax.f32 %v1091_v19, 0.0  ;;  %v3650_v22 = vpack.c.bf16 %v1553_v39, %v1552_v38 }
 0x1ee   : > { %1303 = vmatprep.mubr.f32.mxu0 %v1124_v18 }
 0x1ef   : > { %1304 = vmatmul.mubr.f32.gmra.mrb[30].mxu0 %v1123_v46  ;;  %v1554_v46 = vld [vmem:[#allocation5 + $0x60] sm:$0xff] }
 0x24e   : > { %v3050_v47 = vpop.f32.mrb[0].mxu0 }
 0x24f   : > { %v3051_v54 = vpop.f32.mrb[1].mxu0 }
 0x250   : > { %v3052_v26 = vadd.f32 %v3051_v54, %v3050_v47  ;;  %v1555_v47 = vld [vmem:[#allocation5 + $0x68] sm:$0xff] }
 0x252   : > { %v3053_v48 = vpop.f32.mrb[2].mxu0  ;;  %v1231_v40 = vadd.f32 %v3052_v26, %v4937_v25 }
 0x253   : > { %v3054_v49 = vpop.f32.mrb[3].mxu0 }
 0x254   : > { %v3055_v63 = vadd.f32 %v3054_v49, %v3053_v48  ;;  %v1309_v50 = vmax.f32 %v1231_v40, 0.0  ;;  %v3653_v49 = vpack.c.bf16 %v1555_v47, %v1554_v46 }
 0x256   : > { %v1236_v17 = vadd.f32 %v3055_v63, %v4937_v25  ;;  %v3056_v53 = vpop.f32.mrb[4].mxu0  ;;  %3294 = vmatprep.mubr.f32.mxu1 %v1309_v50 }
 0x257   : > { %v3057_v55 = vpop.f32.mrb[5].mxu0 }
 0x258   : > { %v1310_v57 = vmax.f32 %v1236_v17, 0.0  ;;  %v3058_v58 = vadd.f32 %v3057_v55, %v3056_v53  ;;  %v1557_v17 = vld [vmem:[#allocation5 + $0x78] sm:$0xff] }
 0x25a   : > { %v1325_v61 = vmax.f32 %v1309_v50, %v1310_v57  ;;  %v1241_v62 = vadd.f32 %v3058_v58, %v4937_v25  ;;  %v3059_v2 = vpop.f32.mrb[6].mxu0  ;;  %3295 = vmatmul.mubr.f32.vlgmr.msra.gmra.mrb[0].mxu1 %v1310_v57  ;;  %v3656_v57 = vpack.c.bf16 %v1557_v17, %v1556_v52 }
 0x25b   : > { %v3060_v3 = vpop.f32.mrb[7].mxu0  ;;  %3636 = vmatpush3.bf16.msra.mxu1 %v3635_v56 }
 0x25c   : > { %v1326_v5 = vrot.slane %v1325_v61, 4  ;;  %v1311_v6 = vmax.f32 %v1241_v62, 0.0  ;;  %v3061_v7 = vadd.f32 %v3060_v3, %v3059_v2  ;;  %3637 = vmatprep.subr.bf16.mxu1 %v4238_v16 }
 0x25e   : > { %v1327_v23 = vmax.f32 %v1325_v61, %v1326_v5  ;;  %v1246_v1 = vadd.f32 %v3061_v7, %v4937_v25  ;;  %v3062_v12 = vpop.f32.mrb[8].mxu0  ;;  %3297 = vmatprep.mubr.f32.mxu1 %v1311_v6 }
 0x25f   : > { %v3063_v13 = vpop.f32.mrb[9].mxu0  ;;  %3639 = vmatpush3.bf16.msra.mxu1 %v3638_v4 }
 0x260   : > { %v1312_v20 = vmax.f32 %v1246_v1, 0.0  ;;  %v3064_v21 = vadd.f32 %v3063_v13, %v3062_v12  ;;  %3640 = vmatprep.subr.bf16.mxu1 %v4238_v16  ;;  %v1328_v24 = vrot.slane %v1327_v23, 2 }
 0x262   : > { %v1332_v27 = vmax.f32 %v1311_v6, %v1312_v20  ;;  %v1251_v28 = vadd.f32 %v3064_v21, %v4937_v25  ;;  %3298 = vmatmul.mubr.f32.gmra.mrb[2].mxu1 %v1312_v20  ;;  %v1329_v33 = vmax.f32 %v1327_v23, %v1328_v24 }
 0x263   : > { %3642 = vmatpush3.bf16.msra.mxu1 %v3641_v15 }
 0x264   : > { %v1333_v29 = vrot.slane %v1332_v27, 4  ;;  %v1313_v30 = vmax.f32 %v1251_v28, 0.0  ;;  %3643 = vmatprep.subr.bf16.mxu1 %v4238_v16  ;;  %v1330_v43 = vrot.slane %v1329_v33, 1 }
 0x266   : > { %v1334_v34 = vmax.f32 %v1332_v27, %v1333_v29  ;;  %3300 = vmatprep.mubr.f32.mxu1 %v1313_v30  ;;  %v1331_v54 = vmax.f32 %v1329_v33, %v1330_v43 }
 0x267   : > { %3645 = vmatpush3.bf16.msra.mxu1 %v3644_v11 }
 0x268   : > { %v1335_v36 = vrot.slane %v1334_v34, 2  ;;  %v3065_v37 = vpop.f32.mrb[10].mxu0  ;;  %3646 = vmatprep.subr.bf16.mxu1 %v4238_v16 }
 0x269   : > { %v3066_v41 = vpop.f32.mrb[11].mxu0 }
 0x26a   : > { %v1336_v44 = vmax.f32 %v1334_v34, %v1335_v36  ;;  %v3067_v45 = vadd.f32 %v3066_v41, %v3065_v37 }
 0x26b   : > { %3648 = vmatpush3.bf16.msra.mxu1 %v3647_v35 }
 0x26c   : > { %v1337_v19 = vrot.slane %v1336_v44, 1  ;;  %v1256_v18 = vadd.f32 %v3067_v45, %v4937_v25  ;;  %3649 = vmatprep.subr.bf16.mxu1 %v4238_v16 }
 0x26e   : > { %v1338_v26 = vmax.f32 %v1336_v44, %v1337_v19  ;;  %v1314_v48 = vmax.f32 %v1256_v18, 0.0 }
 0x26f   : > { %v3068_v40 = vpop.f32.mrb[12].mxu0  ;;  %3651 = vmatpush3.bf16.msra.mxu1 %v3650_v22 }
 0x270   : > { %v1574_v63 = vsel %vm1573_vm0, %v1338_v26, %v1331_v54  ;;  %v1339_v50 = vmax.f32 %v1313_v30, %v1314_v48  ;;  %v3069_v51 = vpop.f32.mrb[13].mxu0  ;;  %3301 = vmatmul.mubr.f32.gmra.mrb[4].mxu1 %v1314_v48  ;;  %3652 = vmatprep.subr.bf16.mxu1 %v4238_v16 }
 0x271   : > { %v3070_v53 = vadd.f32 %v3069_v51, %v3068_v40 }
 0x272   : > { %v1340_v55 = vrot.slane %v1339_v50, 4 }
 0x273   : > { %v1261_v56 = vadd.f32 %v3070_v53, %v4937_v25  ;;  %3654 = vmatpush3.bf16.msra.mxu1 %v3653_v49 }
 0x274   : > { %v1341_v58 = vmax.f32 %v1339_v50, %v1340_v55  ;;  %3655 = vmatprep.subr.bf16.mxu1 %v4238_v16 }
 0x275   : > { %v1315_v59 = vmax.f32 %v1261_v56, 0.0 }
 0x276   : > { %v1342_v60 = vrot.slane %v1341_v58, 2 }
 0x277   : > { %3303 = vmatprep.mubr.f32.mxu1 %v1315_v59  ;;  %3657 = vmatpush3.bf16.msra.mxu1 %v3656_v57 }
 0x278   : > { %v1343_v61 = vmax.f32 %v1341_v58, %v1342_v60  ;;  %3690 = vmatprep.subr.bf16.mxu1 %v4238_v16 }
 0x279   : > { %v3071_v62 = vpop.f32.mrb[14].mxu0 }
 0x27a   : > { %v1344_v2 = vrot.slane %v1343_v61, 1  ;;  %v3072_v3 = vpop.f32.mrb[15].mxu0 }
 0x27b   : > { %v3073_v4 = vadd.f32 %v3072_v3, %v3071_v62 }
 0x27c   : > { %v1345_v5 = vmax.f32 %v1343_v61, %v1344_v2 }
 0x27d   : > { %v1266_v6 = vadd.f32 %v3073_v4, %v4937_v25 }
 0x27e   : > { %v1576_v7 = vsel %vm1575_vm1, %v1345_v5, %v1574_v63 }
 0x27f   : > { %v1316_v8 = vmax.f32 %v1266_v6, 0.0 }
 0x281   : > { %v1346_v9 = vmax.f32 %v1315_v59, %v1316_v8  ;;  %v3074_v23 = vpop.f32.mrb[16].mxu0  ;;  %3304 = vmatmul.mubr.f32.gmra.mrb[6].mxu1 %v1316_v8 }
 0x282   : > { %v3075_v1 = vpop.f32.mrb[17].mxu0 }
 0x283   : > { %v1347_v12 = vrot.slane %v1346_v9, 4  ;;  %v3076_v13 = vadd.f32 %v3075_v1, %v3074_v23 }
 0x285   : > { %v1348_v15 = vmax.f32 %v1346_v9, %v1347_v12  ;;  %v1271_v20 = vadd.f32 %v3076_v13, %v4937_v25 }
 0x287   : > { %v1349_v21 = vrot.slane %v1348_v15, 2  ;;  %v1317_v42 = vmax.f32 %v1271_v20, 0.0 }
 0x289   : > { %v1350_v0 = vmax.f32 %v1348_v15, %v1349_v21  ;;  %3306 = vmatprep.mubr.f32.mxu1 %v1317_v42 }
 0x28b   : > { %v1351_v24 = vrot.slane %v1350_v0, 1  ;;  %v3077_v27 = vpop.f32.mrb[18].mxu0 }
 0x28c   : > { %v3078_v28 = vpop.f32.mrb[19].mxu0 }
 0x28d   : > { %v1352_v11 = vmax.f32 %v1350_v0, %v1351_v24  ;;  %v3079_v29 = vadd.f32 %v3078_v28, %v3077_v27 }
 0x28f   : > { %v1276_v30 = vadd.f32 %v3079_v29, %v4937_v25  ;;  %v1578_v31 = vsel %vm1577_vm2, %v1352_v11, %v1576_v7  ;;  %v4240_v11 = vmov 0.0  }
 0x291   : > { %v1318_v32 = vmax.f32 %v1276_v30, 0.0 }
 0x293   : > { %v1353_v33 = vmax.f32 %v1317_v42, %v1318_v32  ;;  %3307 = vmatmul.mubr.f32.gmra.mrb[8].mxu1 %v1318_v32 }
 0x295   : > { %v1354_v34 = vrot.slane %v1353_v33, 4  ;;  %v3080_v35 = vpop.f32.mrb[20].mxu0 }
 0x296   : > { %v3081_v36 = vpop.f32.mrb[21].mxu0 }
 0x297   : > { %v1355_v37 = vmax.f32 %v1353_v33, %v1354_v34  ;;  %v3082_v38 = vadd.f32 %v3081_v36, %v3080_v35  ;;  %v1837_v36 = vld [vmem:[#allocation7 + $0x8] sm:$0xff] }
 0x299   : > { %v1356_v39 = vrot.slane %v1355_v37, 2  ;;  %v1281_v41 = vadd.f32 %v3082_v38, %v4937_v25  ;;  %v1838_v38 = vld [vmem:[#allocation7 + $0x10] sm:$0xff] }
 0x29b   : > { %v1357_v43 = vmax.f32 %v1355_v37, %v1356_v39  ;;  %v1319_v44 = vmax.f32 %v1281_v41, 0.0  ;;  %v1839_v39 = vld [vmem:[#allocation7 + $0x18] sm:$0xff]  ;;  %v1840_v41 = vld [vmem:[#allocation7 + $0x20] sm:$0xff] }
 0x29c   : > { %v3083_v45 = vpop.f32.mrb[22].mxu0 }
 0x29d   : > { %v1358_v22 = vrot.slane %v1357_v43, 1  ;;  %v3084_v19 = vpop.f32.mrb[23].mxu0  ;;  %3309 = vmatprep.mubr.f32.mxu1 %v1319_v44 }
 0x29e   : > { %v3085_v18 = vadd.f32 %v3084_v19, %v3083_v45  ;;  %v1843_v19 = vld [vmem:[#allocation7 + $0x38] sm:$0xff] }
 0x29f   : > { %v1359_v46 = vmax.f32 %v1357_v43, %v1358_v22  ;;  %v3662_v43 = vpack.c.bf16 %v1839_v39, %v1838_v38  ;;  %v1842_v22 = vld [vmem:[#allocation7 + $0x30] sm:$0xff]  ;;  %v4241_v39 = vmov 1966171168  }
 0x2a0   : > { %v1286_v47 = vadd.f32 %v3085_v18, %v4937_v25  ;;  %v3670_v18 = vpack.c.bf16 %v1843_v19, %v1842_v22 }
 0x2a1   : > { %v1580_v54 = vsel %vm1579_vm3, %v1359_v46, %v1578_v31  ;;  %v1844_v46 = vld [vmem:[#allocation7 + $0x40] sm:$0xff] }
 0x2a2   : > { %v1320_v26 = vmax.f32 %v1286_v47, 0.0  ;;  %v1845_v47 = vld [vmem:[#allocation7 + $0x48] sm:$0xff] }
 0x2a4   : > { %v1360_v48 = vmax.f32 %v1319_v44, %v1320_v26  ;;  %3310 = vmatmul.mubr.f32.gmra.mrb[10].mxu1 %v1320_v26  ;;  %v1841_v44 = vld [vmem:[#allocation7 + $0x28] sm:$0xff]  ;;  %v3674_v26 = vpack.c.bf16 %v1845_v47, %v1844_v46 }
 0x2a5   : > { %v3666_v45 = vpack.c.bf16 %v1841_v44, %v1840_v41  ;;  %v1661_v41 = vunpack.c.l.s4 %v4241_v39  ;;  %v3009_v44 = vld [vmem:[%s5238_s7] ss:$0 sm:$0xff] }
 0x2a6   : > { %v1361_v40 = vrot.slane %v1360_v48, 4  ;;  %v3086_v49 = vpop.f32.mrb[24].mxu0 }
 0x2a7   : > { %v3087_v63 = vpop.f32.mrb[25].mxu0 }
 0x2a8   : > { %v1362_v50 = vmax.f32 %v1360_v48, %v1361_v40  ;;  %v3088_v51 = vadd.f32 %v3087_v63, %v3086_v49  ;;  %v1847_v48 = vld [vmem:[#allocation7 + $0x58] sm:$0xff] }
 0x2aa   : > { %v1363_v52 = vrot.slane %v1362_v50, 2  ;;  %v1291_v17 = vadd.f32 %v3088_v51, %v4937_v25  ;;  %v1998_v51 = vld [vmem:[#allocation8 + $0x8] sm:$0xff] }
 0x2ac   : > { %v1364_v53 = vmax.f32 %v1362_v50, %v1363_v52  ;;  %v1321_v55 = vmax.f32 %v1291_v17, 0.0  ;;  %v1997_v50 = vld [vmem:[#allocation8] sm:$0xff] }
 0x2ad   : > { %v3691_v52 = vpack.c.bf16 %v1998_v51, %v1997_v50  ;;  %v1848_v17 = vld [vmem:[#allocation7 + $0x60] sm:$0xff] }
 0x2ae   : > { %v1365_v56 = vrot.slane %v1364_v53, 1  ;;  %v3089_v57 = vpop.f32.mrb[26].mxu0  ;;  %3312 = vmatprep.mubr.f32.mxu1 %v1321_v55 }
 0x2af   : > { %v3090_v58 = vpop.f32.mrb[27].mxu0 }
 0x2b0   : > { %v1366_v59 = vmax.f32 %v1364_v53, %v1365_v56  ;;  %v3091_v60 = vadd.f32 %v3090_v58, %v3089_v57  ;;  %v1849_v53 = vld [vmem:[#allocation7 + $0x68] sm:$0xff]  ;;  %v1999_v56 = vld [vmem:[#allocation8 + $0x10] sm:$0xff]  ;;  %v2000_v57 = vld [vmem:[#allocation8 + $0x18] sm:$0xff] }
 0x2b1   : > { %v1850_v58 = vld [vmem:[#allocation7 + $0x70] sm:$0xff] }
 0x2b2   : > { %v1296_v61 = vadd.f32 %v3091_v60, %v4937_v25  ;;  %v1582_v62 = vsel %vm1581_vm4, %v1366_v59, %v1580_v54  ;;  %v1846_v54 = vld [vmem:[#allocation7 + $0x50] sm:$0xff]  ;;  %v3694_v59 = vpack.c.bf16 %v2000_v57, %v1999_v56  ;;  %v1851_v60 = vld [vmem:[#allocation7 + $0x78] sm:$0xff] }
 0x2b3   : > { %v3678_v40 = vpack.c.bf16 %v1847_v48, %v1846_v54 }
 0x2b4   : > { %v1322_v2 = vmax.f32 %v1296_v61, 0.0 }
 0x2b6   : > { %v1367_v3 = vmax.f32 %v1321_v55, %v1322_v2  ;;  %3313 = vmatmul.mubr.f32.gmra.mrb[12].mxu1 %v1322_v2  ;;  %v3682_v55 = vpack.c.bf16 %v1849_v53, %v1848_v17 }
 0x2b8   : > { %v1368_v4 = vrot.slane %v1367_v3, 4  ;;  %v3092_v5 = vpop.f32.mrb[28].mxu0 }
 0x2b9   : > { %v3093_v6 = vpop.f32.mrb[29].mxu0 }
 0x2ba   : > { %v1369_v7 = vmax.f32 %v1367_v3, %v1368_v4  ;;  %v3094_v8 = vadd.f32 %v3093_v6, %v3092_v5  ;;  %v2001_v3 = vld [vmem:[#allocation8 + $0x20] sm:$0xff]  ;;  %v2002_v4 = vld [vmem:[#allocation8 + $0x28] sm:$0xff]  ;;  %v2003_v6 = vld [vmem:[#allocation8 + $0x30] sm:$0xff] }
 0x2bb   : > { %v3697_v5 = vpack.c.bf16 %v2002_v4, %v2001_v3 }
 0x2bc   : > { %v1370_v9 = vrot.slane %v1369_v7, 2  ;;  %v1301_v23 = vadd.f32 %v3094_v8, %v4937_v25 }
 0x2be   : > { %v1371_v1 = vmax.f32 %v1369_v7, %v1370_v9  ;;  %v1323_v12 = vmax.f32 %v1301_v23, 0.0  ;;  %v2004_v7 = vld [vmem:[#allocation8 + $0x38] sm:$0xff]  ;;  %v2005_v9 = vld [vmem:[#allocation8 + $0x40] sm:$0xff]  ;;  %v2006_v23 = vld [vmem:[#allocation8 + $0x48] sm:$0xff] }
 0x2bf   : > { %v3700_v8 = vpack.c.bf16 %v2004_v7, %v2003_v6 }
 0x2c0   : > { %v1372_v13 = vrot.slane %v1371_v1, 1  ;;  %3315 = vmatprep.mubr.f32.mxu1 %v1323_v12 }
 0x2c2   : > { %v1373_v15 = vmax.f32 %v1371_v1, %v1372_v13  ;;  %v3095_v20 = vpop.f32.mrb[30].mxu0  ;;  %v3703_v1 = vpack.c.bf16 %v2006_v23, %v2005_v9  ;;  %v2007_v13 = vld [vmem:[#allocation8 + $0x50] sm:$0xff] }
 0x2c3   : > { %v3096_v21 = vpop.f32.mrb[31].mxu0 }
 0x2c4   : > { %v3097_v42 = vadd.f32 %v3096_v21, %v3095_v20  ;;  %v1584_v0 = vsel %vm1583_vm5, %v1373_v15, %v1582_v62  ;;  %v3686_v62 = vpack.c.bf16 %v1851_v60, %v1850_v58  ;;  %v2008_v15 = vld [vmem:[#allocation8 + $0x58] sm:$0xff] }
 0x2c5   : > { %v3706_v21 = vpack.c.bf16 %v2008_v15, %v2007_v13 }
 0x2c6   : > { %v1306_v24 = vadd.f32 %v3097_v42, %v4937_v25  ;;  %v1836_v25 = vld [vmem:[#allocation7] sm:$0xff] }
 0x2c7   : > { %v3658_v37 = vpack.c.bf16 %v1837_v36, %v1836_v25  ;;  %v2009_v42 = vld [vmem:[#allocation8 + $0x60] sm:$0xff] }
 0x2c8   : > { %v1324_v27 = vmax.f32 %v1306_v24, 0.0 }
 0x2c9   : > { %3659 = vmatprep.subr.bf16.mxu0 %v3658_v37 }
 0x2ca   : > { %v1374_v28 = vmax.f32 %v1323_v12, %v1324_v27  ;;  %3316 = vmatmul.mubr.f32.gmra.mrb[14].mxu1 %v1324_v27  ;;  %3661 = vmatpush3.bf16.msra.mxu0 %v3658_v37  ;;  %v2011_v27 = vld [vmem:[#allocation8 + $0x70] sm:$0xff] }
 0x2cb   : > { %3350 = vmatprep.mubr.msk.f32.mxu1 %vm4239_vm6, %v4240_v11  ;;  %3663 = vmatprep.subr.bf16.mxu0 %v3662_v43 }
 0x2cc   : > { %v1375_v29 = vrot.slane %v1374_v28, 4 }
 0x2ce   : > { %v1376_v30 = vmax.f32 %v1374_v28, %v1375_v29  ;;  %3665 = vmatpush3.bf16.msra.mxu0 %v3662_v43  ;;  %v2012_v28 = vld [vmem:[#allocation8 + $0x78] sm:$0xff]  ;;  %v1662_v43 = vunpack.c.0.s8 %v1661_v41 }
 0x2cf   : > { %3667 = vmatprep.subr.bf16.mxu0 %v3666_v45  ;;  %v3712_v29 = vpack.c.bf16 %v2012_v28, %v2011_v27 }
 0x2d0   : > { %v1377_v31 = vrot.slane %v1376_v30, 2 }
 0x2d2   : > { %v1378_v32 = vmax.f32 %v1376_v30, %v1377_v31  ;;  %3669 = vmatpush3.bf16.msra.mxu0 %v3666_v45  ;;  %v5006_v45 = vsub.s32 %v1662_v43, %v4745_v10 }
 0x2d3   : > { %3671 = vmatprep.subr.bf16.mxu0 %v3670_v18 }
 0x2d4   : > { %v1379_v33 = vrot.slane %v1378_v32, 1 }
 0x2d6   : > { %v1380_v34 = vmax.f32 %v1378_v32, %v1379_v33  ;;  %3673 = vmatpush3.bf16.msra.mxu0 %v3670_v18 }
 0x2d7   : > { %3675 = vmatprep.subr.bf16.mxu0 %v3674_v26 }
 0x2d8   : > { %v1586_v35 = vsel %vm1585_vm7, %v1380_v34, %v1584_v0  ;;  %v2010_v0 = vld [vmem:[#allocation8 + $0x68] sm:$0xff] }
 0x2d9   : > { %3351 = vmatmul.mubr.f32.vlgmr.msra.gmra.mrb[16].mxu1 %v1586_v35  ;;  %v3709_v24 = vpack.c.bf16 %v2010_v0, %v2009_v42 }
 0x2da   : > { %3441 = vmatprep.mubr.msk.f32.mxu1 %vm4239_vm6, %v4240_v11  ;;  %3677 = vmatpush3.bf16.msra.mxu0 %v3674_v26 }
 0x2db   : > { %3679 = vmatprep.subr.bf16.mxu0 %v3678_v40  ;;  %3692 = vmatpush3.bf16.msra.mxu1 %v3691_v52 }
 0x2dc   : > { %3693 = vmatprep.subr.bf16.mxu1 %v4238_v16 }
 0x2de   : > { %3681 = vmatpush3.bf16.msra.mxu0 %v3678_v40 }
 0x2df   : > { %3683 = vmatprep.subr.bf16.mxu0 %v3682_v55  ;;  %3695 = vmatpush3.bf16.msra.mxu1 %v3694_v59 }
 0x2e0   : > { %3696 = vmatprep.subr.bf16.mxu1 %v4238_v16 }
 0x2e2   : > { %3685 = vmatpush3.bf16.msra.mxu0 %v3682_v55 }
 0x2e3   : > { %3687 = vmatprep.subr.bf16.mxu0 %v3686_v62  ;;  %3698 = vmatpush3.bf16.msra.mxu1 %v3697_v5 }
 0x2e4   : > { %3699 = vmatprep.subr.bf16.mxu1 %v4238_v16 }
 0x2e6   : > { %3689 = vmatpush3.bf16.msra.mxu0 %v3686_v62 }
 0x2e7   : > { %3701 = vmatpush3.bf16.msra.mxu1 %v3700_v8 }
 0x2e8   : > { %3702 = vmatprep.subr.bf16.mxu1 %v4238_v16 }
 0x2eb   : > { %3704 = vmatpush3.bf16.msra.mxu1 %v3703_v1 }
 0x2ec   : > { %3705 = vmatprep.subr.bf16.mxu1 %v4238_v16 }
 0x2ef   : > { %3707 = vmatpush3.bf16.msra.mxu1 %v3706_v21 }
 0x2f0   : > { %3708 = vmatprep.subr.bf16.mxu1 %v4238_v16 }
 0x2f3   : > { %3710 = vmatpush3.bf16.msra.mxu1 %v3709_v24 }
 0x2f4   : > { %3711 = vmatprep.subr.bf16.mxu1 %v4238_v16 }
 0x2f7   : > { %3713 = vmatpush3.bf16.msra.mxu1 %v3712_v29 }
 0x2f8   : > { %3746 = vmatprep.subr.bf16.mxu1 %v4238_v16 }
 0x32d   : > { %v4974_v49 = vpop.f32.mrb[0].mxu1 }
 0x32e   : > { %v4976_v63 = vpop.f32.mrb[1].mxu1 }
 0x335   : > { %v4979_v61 = vpop.f32.mrb[2].mxu1 }
 0x336   : > { %v4981_v2 = vpop.f32.mrb[3].mxu1 }
 0x343   : > { %v3302_v12 = vpop.f32.mrb[4].mxu1 }
 0x344   : > { %v1483_v20 = vpop.f32.mrb[5].mxu1 }
 0x354   : > { %v3305_v30 = vpop.f32.mrb[6].mxu1 }
 0x355   : > { %v1493_v31 = vpop.f32.mrb[7].mxu1 }
 0x366   : > { %v3308_v32 = vpop.f32.mrb[8].mxu1 }
 0x367   : > { %v1503_v33 = vpop.f32.mrb[9].mxu1 }
 0x377   : > { %v4990_v34 = vpop.f32.mrb[10].mxu1 }
 0x378   : > { %v4992_v35 = vpop.f32.mrb[11].mxu1 }
 0x389   : > { %v4994_v25 = vpop.f32.mrb[12].mxu1 }
 0x38a   : > { %v4996_v36 = vpop.f32.mrb[13].mxu1 }
 0x39d   : > { %v4998_v37 = vpop.f32.mrb[14].mxu1 }
 0x39e   : > { %v5000_v38 = vpop.f32.mrb[15].mxu1 }
 0x3ac   : > { %v1654_v22 = vpop.f32.mrb[16].mxu1 }
 0x3ad   : > { %v1655_v19 = vadd.f32 %v3009_v44, %v1654_v22  ;;  %v3352_v18 = vpop.f32.mrb[17].mxu1 }
 0x3af   : > { %v1659_v46 = vcombine.high %v1655_v19, %v1655_v19  ;;  %v1666_v47 = vrot.slane %v1655_v19, %v5006_v45 }
 0x3b1   : > { %v1673_v54 = vrot.slane %v1659_v46, %v5006_v45  ;;  %v1674_v26 = vcombine.high %v1666_v47, %v1666_v47  ;;  %v1682_v48 = vrot.slane %v1666_v47, %v5006_v45 }
 0x3b3   : > { %v1675_v40 = vcombine.high %v1673_v54, %v1673_v54  ;;  %v5012_v50 = vrot.slane %v1673_v54, %v5006_v45  ;;  %v1696_v51 = vrot.slane %v1674_v26, %v5006_v45  ;;  %v1704_v52 = vcombine.high %v1682_v48, %v1682_v48 }
 0x3b4   : > { %v1711_v10 = vrot.slane %v1682_v48, %v4755_v14 }
 0x3b5   : > { %v1715_v17 = vrot.slane %v1696_v51, %v4755_v14  ;;  %v1719_v53 = vrot.slane %v1704_v52, %v4755_v14  ;;  %v1706_v55 = vcombine.high %v1696_v51, %v1696_v51  ;;  %v1727_v56 = vrot.slane %v5012_v50, %v4755_v14 }
 0x3b6   : > { %v1748_v57 = vadd.f32 %v1711_v10, %v4976_v63  ;;  %v1749_v58 = vadd.f32 %v4974_v49, %v1711_v10  ;;  %v1703_v59 = vrot.slane %v1675_v40, %v5006_v45  ;;  %v1705_v60 = vcombine.high %v5012_v50, %v5012_v50 }
 0x3b7   : > { %v1750_v62 = vadd.f32 %v1715_v17, %v4981_v2  ;;  %v1751_v3 = vadd.f32 %v4979_v61, %v1715_v17  ;;  %v1752_v4 = vadd.f32 %v1719_v53, %v1483_v20  ;;  %v1753_v5 = vadd.f32 %v3302_v12, %v1719_v53 }
 0x3b8   : > { %v1764_v6 = vmax.f32 %v1748_v57, 0.0  ;;  %v1765_v7 = vmax.f32 %v1749_v58, 0.0  ;;  %v1723_v8 = vrot.slane %v1706_v55, %v4755_v14  ;;  %v5028_v9 = vadd.f32 %v1727_v56, %v1503_v33 }
 0x3b9   : > { %v1766_v63 = vmax.f32 %v1750_v62, 0.0  ;;  %v1767_v23 = vmax.f32 %v1751_v3, 0.0  ;;  %v1768_v49 = vmax.f32 %v1752_v4, 0.0  ;;  %v1769_v1 = vmax.f32 %v1753_v5, 0.0 }
 0x3ba   : > { %v1780_v13 = vmax.f32 %v1764_v6, %v1765_v7  ;;  %3385 = vmatprep.mubr.f32.mxu0 %v1764_v6  ;;  %v1754_v15 = vadd.f32 %v1723_v8, %v1493_v31  ;;  %v1755_v21 = vadd.f32 %v3305_v30, %v1723_v8  ;;  %v1772_v2 = vmax.f32 %v5028_v9, 0.0 }
 0x3bb   : > { %3386 = vmatmul.mubr.f32.vlgmr.msra.gmra.mrb[32].mxu0 %v1765_v7  ;;  %v1787_v61 = vmax.f32 %v1766_v63, %v1767_v23  ;;  %v1794_v20 = vmax.f32 %v1768_v49, %v1769_v1  ;;  %v5031_v12 = vadd.f32 %v3308_v32, %v1727_v56  ;;  %v1707_v42 = vcombine.high %v1703_v59, %v1703_v59 }
 0x3bc   : > { %v1781_v0 = vrot.slane %v1780_v13, 4  ;;  %3388 = vmatprep.mubr.f32.mxu0 %v1766_v63  ;;  %v1770_v24 = vmax.f32 %v1754_v15, 0.0  ;;  %v1771_v27 = vmax.f32 %v1755_v21, 0.0  ;;  %v1731_v28 = vrot.slane %v1703_v59, %v4755_v14 }
 0x3bd   : > { %v1788_v29 = vrot.slane %v1787_v61, 4  ;;  %v1795_v33 = vrot.slane %v1794_v20, 4  ;;  %v1773_v39 = vmax.f32 %v5031_v12, 0.0  ;;  %v1739_v30 = vrot.slane %v1707_v42, %v4755_v14 }
 0x3be   : > { %v1782_v31 = vmax.f32 %v1780_v13, %v1781_v0  ;;  %v1801_v41 = vmax.f32 %v1770_v24, %v1771_v27  ;;  %v1758_v43 = vadd.f32 %v1731_v28, %v4992_v35  ;;  %v5038_v32 = vadd.f32 %v4990_v34, %v1731_v28 }
 0x3bf   : > { %v1789_v44 = vmax.f32 %v1787_v61, %v1788_v29  ;;  %3389 = vmatmul.mubr.f32.gmra.mrb[34].mxu0 %v1767_v23  ;;  %v1796_v22 = vmax.f32 %v1794_v20, %v1795_v33  ;;  %v1808_v19 = vmax.f32 %v1772_v2, %v1773_v39  ;;  %v5041_v18 = vadd.f32 %v1739_v30, %v5000_v38 }
 0x3c0   : > { %v1783_v46 = vrot.slane %v1782_v31, 2  ;;  %3391 = vmatprep.mubr.f32.mxu0 %v1768_v49  ;;  %v1802_v47 = vrot.slane %v1801_v41, 4  ;;  %v5044_v54 = vadd.f32 %v4998_v37, %v1739_v30  ;;  %v1774_v26 = vmax.f32 %v1758_v43, 0.0 }
 0x3c1   : > { %v1790_v48 = vrot.slane %v1789_v44, 2  ;;  %v1797_v40 = vrot.slane %v1796_v22, 2  ;;  %v1809_v35 = vrot.slane %v1808_v19, 4  ;;  %v1778_v34 = vmax.f32 %v5041_v18, 0.0 }
 0x3c2   : > { %v1784_v50 = vmax.f32 %v1782_v31, %v1783_v46  ;;  %v1803_v51 = vmax.f32 %v1801_v41, %v1802_v47  ;;  %v1779_v52 = vmax.f32 %v5044_v54, 0.0  ;;  %v1775_v10 = vmax.f32 %v5038_v32, 0.0  ;;  %v2284_v54 = vld [vmem:[#allocation10] sm:$0xff] }
 0x3c3   : > { %v1791_v38 = vmax.f32 %v1789_v44, %v1790_v48  ;;  %v1798_v17 = vmax.f32 %v1796_v22, %v1797_v40  ;;  %3392 = vmatmul.mubr.f32.gmra.mrb[36].mxu0 %v1769_v1  ;;  %v1810_v53 = vmax.f32 %v1808_v19, %v1809_v35  ;;  %v1735_v55 = vrot.slane %v1705_v60, %v4755_v14  ;;  %v2286_v40 = vld [vmem:[#allocation10 + $0x10] sm:$0xff]  ;;  %v2287_v35 = vld [vmem:[#allocation10 + $0x18] sm:$0xff] }
 0x3c4   : > { %v1785_v37 = vrot.slane %v1784_v50, 1  ;;  %3394 = vmatprep.mubr.f32.mxu0 %v1770_v24  ;;  %v1804_v56 = vrot.slane %v1803_v51, 2  ;;  %v1815_v57 = vmax.f32 %v1774_v26, %v1775_v10  ;;  %v1829_v58 = vmax.f32 %v1778_v34, %v1779_v52 }
 0x3c5   : > { %v1792_v59 = vrot.slane %v1791_v38, 1  ;;  %v1799_v62 = vrot.slane %v1798_v17, 1  ;;  %v1811_v3 = vrot.slane %v1810_v53, 2  ;;  %v1760_v4 = vadd.f32 %v1735_v55, %v4996_v36 }
 0x3c6   : > { %v1786_v5 = vmax.f32 %v1784_v50, %v1785_v37  ;;  %v1805_v6 = vmax.f32 %v1803_v51, %v1804_v56  ;;  %v1816_v7 = vrot.slane %v1815_v57, 4  ;;  %v1761_v8 = vadd.f32 %v4994_v25, %v1735_v55  ;;  %v2289_v51 = vld [vmem:[#allocation10 + $0x28] sm:$0xff]  ;;  %v2294_v56 = vld [vmem:[#allocation10 + $0x50] sm:$0xff] }
 0x3c7   : > { %v1793_v9 = vmax.f32 %v1791_v38, %v1792_v59  ;;  %v1800_v63 = vmax.f32 %v1798_v17, %v1799_v62  ;;  %3395 = vmatmul.mubr.f32.gmra.mrb[38].mxu0 %v1771_v27  ;;  %v1812_v23 = vmax.f32 %v1810_v53, %v1811_v3  ;;  %v1776_v60 = vmax.f32 %v1760_v4, 0.0  ;;  %v2291_v38 = vld [vmem:[#allocation10 + $0x38] sm:$0xff]  ;;  %v2292_v53 = vld [vmem:[#allocation10 + $0x40] sm:$0xff]  ;;  %v2293_v55 = vld [vmem:[#allocation10 + $0x48] sm:$0xff] }
 0x3c8   : > { %v1806_v49 = vrot.slane %v1805_v6, 1  ;;  %3397 = vmatprep.mubr.f32.mxu0 %v1772_v2  ;;  %v1817_v1 = vmax.f32 %v1815_v57, %v1816_v7  ;;  %v1777_v13 = vmax.f32 %v1761_v8, 0.0  ;;  %v1830_v15 = vrot.slane %v1829_v58, 4  ;;  %v2295_v57 = vld [vmem:[#allocation10 + $0x58] sm:$0xff]  ;;  %v2445_v59 = vld [vmem:[#allocation11] sm:$0xff]  ;;  %v2446_v62 = vld [vmem:[#allocation11 + $0x8] sm:$0xff] }
 0x3c9   : > { %v2028_v21 = vsel %vm1573_vm0, %v1793_v9, %v1786_v5  ;;  %v1813_v61 = vrot.slane %v1812_v23, 1  ;;  %v3718_v50 = vpack.c.bf16 %v2287_v35, %v2286_v40  ;;  %v3730_v37 = vpack.c.bf16 %v2293_v55, %v2292_v53  ;;  %v2296_v4 = vld [vmem:[#allocation10 + $0x60] sm:$0xff]  ;;  %v2297_v5 = vld [vmem:[#allocation10 + $0x68] sm:$0xff]  ;;  %v2447_v7 = vld [vmem:[#allocation11 + $0x10] sm:$0xff] }
 0x3ca   : > { %v1807_v20 = vmax.f32 %v1805_v6, %v1806_v49  ;;  %v1818_v36 = vrot.slane %v1817_v1, 2  ;;  %v1822_v12 = vmax.f32 %v1776_v60, %v1777_v13  ;;  %v1831_v42 = vmax.f32 %v1829_v58, %v1830_v15  ;;  %v2448_v8 = vld [vmem:[#allocation11 + $0x18] sm:$0xff]  ;;  %v2449_v49 = vld [vmem:[#allocation11 + $0x20] sm:$0xff]  ;;  %v2451_v15 = vld [vmem:[#allocation11 + $0x30] sm:$0xff] }
 0x3cb   : > { %v1814_v0 = vmax.f32 %v1812_v23, %v1813_v61  ;;  %3398 = vmatmul.mubr.f32.gmra.mrb[40].mxu0 %v1773_v39  ;;  %v2029_v25 = vsel %vm1575_vm1, %v1800_v63, %v2028_v21  ;;  %v3734_v58 = vpack.c.bf16 %v2295_v57, %v2294_v56  ;;  %v3747_v3 = vpack.c.bf16 %v2446_v62, %v2445_v59  ;;  %v2298_v63 = vld [vmem:[#allocation10 + $0x70] sm:$0xff]  ;;  %v2299_v23 = vld [vmem:[#allocation10 + $0x78] sm:$0xff]  ;;  %v3010_v40 = vld [vmem:[%s5241_s10] ss:$0 sm:$0xff] }
 0x3cc   : > { %3400 = vmatprep.mubr.f32.mxu0 %v1774_v26  ;;  %v1819_v24 = vmax.f32 %v1817_v1, %v1818_v36  ;;  %v1823_v27 = vrot.slane %v1822_v12, 4  ;;  %v1832_v28 = vrot.slane %v1831_v42, 2  ;;  %v2030_v2 = vsel %vm1577_vm2, %v1807_v20, %v2029_v25  ;;  %v2285_v26 = vld [vmem:[#allocation10 + $0x8] sm:$0xff]  ;;  %v2452_v21 = vld [vmem:[#allocation11 + $0x38] sm:$0xff]  ;;  %v2453_v20 = vld [vmem:[#allocation11 + $0x40] sm:$0xff] }
 0x3cd   : > { %v2031_v29 = vsel %vm1579_vm3, %v1814_v0, %v2030_v2  ;;  %v3714_v48 = vpack.c.bf16 %v2285_v26, %v2284_v54  ;;  %v3738_v6 = vpack.c.bf16 %v2297_v5, %v2296_v4  ;;  %v3750_v9 = vpack.c.bf16 %v2448_v8, %v2447_v7  ;;  %v2450_v1 = vld [vmem:[#allocation11 + $0x28] sm:$0xff]  ;;  %v2456_v0 = vld [vmem:[#allocation11 + $0x58] sm:$0xff]  ;;  %v2459_v2 = vld [vmem:[#allocation11 + $0x70] sm:$0xff] }
 0x3ce   : > { %v1820_v33 = vrot.slane %v1819_v24, 1  ;;  %v1824_v30 = vmax.f32 %v1822_v12, %v1823_v27  ;;  %v1833_v31 = vmax.f32 %v1831_v42, %v1832_v28  ;;  %v3756_v61 = vpack.c.bf16 %v2452_v21, %v2451_v15  ;;  %v2454_v36 = vld [vmem:[#allocation11 + $0x48] sm:$0xff]  ;;  %v2455_v42 = vld [vmem:[#allocation11 + $0x50] sm:$0xff] }
 0x3cf   : > { %3401 = vmatmul.mubr.f32.gmra.mrb[42].mxu0 %v1775_v10  ;;  %3715 = vmatprep.subr.bf16.mxu0 %v3714_v48  ;;  %v2290_v10 = vld [vmem:[#allocation10 + $0x30] sm:$0xff]  ;;  %v3759_v12 = vpack.c.bf16 %v2454_v36, %v2453_v20  ;;  %v3762_v25 = vpack.c.bf16 %v2456_v0, %v2455_v42  ;;  %v2458_v27 = vld [vmem:[#allocation11 + $0x68] sm:$0xff] }
 0x3d0   : > { %v1821_v41 = vmax.f32 %v1819_v24, %v1820_v33  ;;  %v1825_v43 = vrot.slane %v1824_v30, 2  ;;  %3403 = vmatprep.mubr.f32.mxu0 %v1776_v60  ;;  %v1834_v44 = vrot.slane %v1833_v31, 1  ;;  %3717 = vmatpush3.bf16.msra.mxu0 %v3714_v48  ;;  %v3726_v17 = vpack.c.bf16 %v2291_v38, %v2290_v10  ;;  %v2457_v24 = vld [vmem:[#allocation11 + $0x60] sm:$0xff] }
 0x3d1   : > { %3719 = vmatprep.subr.bf16.mxu0 %v3718_v50  ;;  %v3742_v60 = vpack.c.bf16 %v2299_v23, %v2298_v63  ;;  %v3765_v28 = vpack.c.bf16 %v2458_v27, %v2457_v24 }
 0x3d2   : > { %v1826_v32 = vmax.f32 %v1824_v30, %v1825_v43  ;;  %v2032_v39 = vsel %vm1581_vm4, %v1821_v41, %v2031_v29  ;;  %v1835_v18 = vmax.f32 %v1833_v31, %v1834_v44  ;;  %v2460_v29 = vld [vmem:[#allocation11 + $0x78] sm:$0xff] }
 0x3d3   : > { %3404 = vmatmul.mubr.f32.gmra.mrb[44].mxu0 %v1777_v13  ;;  %v3753_v13 = vpack.c.bf16 %v2450_v1, %v2449_v49  ;;  %v3768_v33 = vpack.c.bf16 %v2460_v29, %v2459_v2 }
 0x3d4   : > { %v1827_v22 = vrot.slane %v1826_v32, 1  ;;  %3406 = vmatprep.mubr.f32.mxu0 %v1778_v34  ;;  %3721 = vmatpush3.bf16.msra.mxu0 %v3718_v50  ;;  %v2288_v34 = vld [vmem:[#allocation10 + $0x20] sm:$0xff] }
 0x3d6   : > { %v1828_v19 = vmax.f32 %v1826_v32, %v1827_v22 }
 0x3d7   : > { %3407 = vmatmul.mubr.f32.gmra.mrb[46].mxu0 %v1779_v52  ;;  %v3722_v52 = vpack.c.bf16 %v2289_v51, %v2288_v34 }
 0x3d8   : > { %v2033_v46 = vsel %vm1583_vm5, %v1828_v19, %v2032_v39 }
 0x3d9   : > { %v2034_v47 = vsel %vm1585_vm7, %v1835_v18, %v2033_v46  ;;  %3723 = vmatprep.subr.bf16.mxu0 %v3722_v52 }
 0x3da   : > { %3442 = vmatmul.mubr.f32.vlgmr.msra.gmra.mrb[18].mxu1 %v2034_v47  ;;  %3725 = vmatpush3.bf16.msra.mxu0 %v3722_v52 }
 0x3db   : > { %3532 = vmatprep.mubr.msk.f32.mxu1 %vm4239_vm6, %v4240_v11  ;;  %3727 = vmatprep.subr.bf16.mxu0 %v3726_v17 }
 0x3dc   : > { %3748 = vmatpush3.bf16.msra.mxu1 %v3747_v3 }
 0x3dd   : > { %3749 = vmatprep.subr.bf16.mxu1 %v4238_v16 }
 0x3de   : > { %3729 = vmatpush3.bf16.msra.mxu0 %v3726_v17 }
 0x3df   : > { %3731 = vmatprep.subr.bf16.mxu0 %v3730_v37 }
 0x3e0   : > { %3751 = vmatpush3.bf16.msra.mxu1 %v3750_v9 }
 0x3e1   : > { %3752 = vmatprep.subr.bf16.mxu1 %v4238_v16 }
 0x3e2   : > { %3733 = vmatpush3.bf16.msra.mxu0 %v3730_v37 }
 0x3e3   : > { %3735 = vmatprep.subr.bf16.mxu0 %v3734_v58 }
 0x3e4   : > { %3754 = vmatpush3.bf16.msra.mxu1 %v3753_v13 }
 0x3e5   : > { %3755 = vmatprep.subr.bf16.mxu1 %v4238_v16 }
 0x3e6   : > { %3737 = vmatpush3.bf16.msra.mxu0 %v3734_v58 }
 0x3e7   : > { %3739 = vmatprep.subr.bf16.mxu0 %v3738_v6 }
 0x3e8   : > { %3757 = vmatpush3.bf16.msra.mxu1 %v3756_v61 }
 0x3e9   : > { %3758 = vmatprep.subr.bf16.mxu1 %v4238_v16 }
 0x3ea   : > { %3741 = vmatpush3.bf16.msra.mxu0 %v3738_v6 }
 0x3eb   : > { %3743 = vmatprep.subr.bf16.mxu0 %v3742_v60 }
 0x3ec   : > { %3760 = vmatpush3.bf16.msra.mxu1 %v3759_v12 }
 0x3ed   : > { %3761 = vmatprep.subr.bf16.mxu1 %v4238_v16 }
 0x3ee   : > { %3745 = vmatpush3.bf16.msra.mxu0 %v3742_v60 }
 0x3ef   : > { %3770 = vmatprep.subr.bf16.mxu0 %v4238_v16 }
 0x3f0   : > { %3763 = vmatpush3.bf16.msra.mxu1 %v3762_v25 }
 0x3f1   : > { %3764 = vmatprep.subr.bf16.mxu1 %v4238_v16 }
 0x3f4   : > { %3766 = vmatpush3.bf16.msra.mxu1 %v3765_v28 }
 0x3f5   : > { %3767 = vmatprep.subr.bf16.mxu1 %v4238_v16 }
 0x3f8   : > { %3769 = vmatpush3.bf16.msra.mxu1 %v3768_v33 }
 0x48e   : > { %v3387_v30 = vpop.f32.mrb[32].mxu0 }
 0x48f   : > { %v1918_v31 = vpop.f32.mrb[33].mxu0 }
 0x492   : > { %v3390_v41 = vpop.f32.mrb[34].mxu0 }
 0x493   : > { %v1928_v43 = vpop.f32.mrb[35].mxu0 }
 0x496   : > { %v3393_v32 = vpop.f32.mrb[36].mxu0 }
 0x497   : > { %v1938_v39 = vpop.f32.mrb[37].mxu0 }
 0x49a   : > { %v5069_v44 = vpop.f32.mrb[38].mxu0 }
 0x49b   : > { %v5071_v22 = vpop.f32.mrb[39].mxu0 }
 0x49e   : > { %v5073_v19 = vpop.f32.mrb[40].mxu0 }
 0x49f   : > { %v1958_v18 = vpop.f32.mrb[41].mxu0 }
 0x4a2   : > { %v5075_v46 = vpop.f32.mrb[42].mxu0 }
 0x4a3   : > { %v5077_v47 = vpop.f32.mrb[43].mxu0 }
 0x4a6   : > { %v3405_v54 = vpop.f32.mrb[44].mxu0 }
 0x4a7   : > { %v1978_v26 = vpop.f32.mrb[45].mxu0 }
 0x4aa   : > { %v3408_v48 = vpop.f32.mrb[46].mxu0 }
 0x4ab   : > { %v1988_v35 = vpop.f32.mrb[47].mxu0 }
 0x4ad   : > { %v2102_v50 = vpop.f32.mrb[18].mxu1 }
 0x4ae   : > { %v2103_v34 = vadd.f32 %v3010_v40, %v2102_v50  ;;  %v3443_v51 = vpop.f32.mrb[19].mxu1 }
 0x4b0   : > { %v2107_v52 = vcombine.high %v2103_v34, %v2103_v34  ;;  %v2114_v10 = vrot.slane %v2103_v34, %v5006_v45 }
 0x4b2   : > { %v2121_v38 = vrot.slane %v2107_v52, %v5006_v45  ;;  %v2122_v17 = vcombine.high %v2114_v10, %v2114_v10  ;;  %v2130_v53 = vrot.slane %v2114_v10, %v5006_v45 }
 0x4b4   : > { %v2123_v55 = vcombine.high %v2121_v38, %v2121_v38  ;;  %v2144_v37 = vrot.slane %v2122_v17, %v5006_v45  ;;  %v2152_v56 = vcombine.high %v2130_v53, %v2130_v53  ;;  %v2137_v57 = vrot.slane %v2121_v38, %v5006_v45 }
 0x4b5   : > { %v2159_v58 = vrot.slane %v2130_v53, %v4755_v14 }
 0x4b6   : > { %v2153_v59 = vcombine.high %v2137_v57, %v2137_v57  ;;  %v2151_v62 = vrot.slane %v2123_v55, %v5006_v45  ;;  %v2163_v3 = vrot.slane %v2144_v37, %v4755_v14  ;;  %v2167_v4 = vrot.slane %v2152_v56, %v4755_v14 }
 0x4b7   : > { %v2196_v5 = vadd.f32 %v2159_v58, %v1918_v31  ;;  %v2197_v6 = vadd.f32 %v3387_v30, %v2159_v58  ;;  %v2154_v7 = vcombine.high %v2144_v37, %v2144_v37  ;;  %v2175_v8 = vrot.slane %v2137_v57, %v4755_v14 }
 0x4b8   : > { %v2183_v9 = vrot.slane %v2153_v59, %v4755_v14  ;;  %v2155_v63 = vcombine.high %v2151_v62, %v2151_v62  ;;  %v2198_v23 = vadd.f32 %v2163_v3, %v1928_v43  ;;  %v2199_v60 = vadd.f32 %v3390_v41, %v2163_v3 }
 0x4b9   : > { %v2212_v49 = vmax.f32 %v2196_v5, 0.0  ;;  %v2213_v1 = vmax.f32 %v2197_v6, 0.0  ;;  %v2200_v13 = vadd.f32 %v2167_v4, %v1938_v39  ;;  %v2201_v15 = vadd.f32 %v3393_v32, %v2167_v4 }
 0x4ba   : > { %v5093_v21 = vadd.f32 %v3405_v54, %v2183_v9  ;;  %v5095_v61 = vadd.f32 %v2183_v9, %v1978_v26  ;;  %v2187_v20 = vrot.slane %v2155_v63, %v4755_v14  ;;  %v2214_v36 = vmax.f32 %v2198_v23, 0.0 }
 0x4bb   : > { %v2228_v12 = vmax.f32 %v2212_v49, %v2213_v1  ;;  %3476 = vmatprep.mubr.f32.mxu0 %v2212_v49  ;;  %v2215_v42 = vmax.f32 %v2199_v60, 0.0  ;;  %v2216_v0 = vmax.f32 %v2200_v13, 0.0  ;;  %v2217_v25 = vmax.f32 %v2201_v15, 0.0 }
 0x4bc   : > { %v2225_v24 = vmax.f32 %v5093_v21, 0.0  ;;  %v2224_v27 = vmax.f32 %v5095_v61, 0.0  ;;  %v5100_v28 = vadd.f32 %v3408_v48, %v2187_v20  ;;  %v5102_v2 = vadd.f32 %v2187_v20, %v1988_v35  ;;  %3477 = vmatmul.mubr.f32.vlgmr.msra.gmra.mrb[48].mxu0 %v2213_v1 }
 0x4bd   : > { %v2229_v29 = vrot.slane %v2228_v12, 4  ;;  %3479 = vmatprep.mubr.f32.mxu0 %v2214_v36  ;;  %v2235_v33 = vmax.f32 %v2214_v36, %v2215_v42  ;;  %v2242_v30 = vmax.f32 %v2216_v0, %v2217_v25  ;;  %v2171_v31 = vrot.slane %v2154_v7, %v4755_v14 }
 0x4be   : > { %v2270_v41 = vmax.f32 %v2224_v27, %v2225_v24  ;;  %v2227_v43 = vmax.f32 %v5100_v28, 0.0  ;;  %v2226_v32 = vmax.f32 %v5102_v2, 0.0  ;;  %v2204_v39 = vadd.f32 %v2175_v8, %v1958_v18  ;;  %v2732_v2 = vld [vmem:[#allocation13] sm:$0xff]  ;;  %v2734_v28 = vld [vmem:[#allocation13 + $0x10] sm:$0xff] }
 0x4bf   : > { %v2230_v54 = vmax.f32 %v2228_v12, %v2229_v29  ;;  %v2236_v26 = vrot.slane %v2235_v33, 4  ;;  %v2243_v48 = vrot.slane %v2242_v30, 4  ;;  %v2202_v40 = vadd.f32 %v2171_v31, %v5071_v22 }
 0x4c0   : > { %v2277_v35 = vmax.f32 %v2226_v32, %v2227_v43  ;;  %3480 = vmatmul.mubr.f32.gmra.mrb[50].mxu0 %v2215_v42  ;;  %v2203_v50 = vadd.f32 %v5069_v44, %v2171_v31  ;;  %v2220_v18 = vmax.f32 %v2204_v39, 0.0  ;;  %v2205_v17 = vadd.f32 %v5073_v19, %v2175_v8 }
 0x4c1   : > { %v2231_v34 = vrot.slane %v2230_v54, 2  ;;  %v2237_v51 = vmax.f32 %v2235_v33, %v2236_v26  ;;  %3482 = vmatprep.mubr.f32.mxu0 %v2216_v0  ;;  %v2244_v52 = vmax.f32 %v2242_v30, %v2243_v48  ;;  %v2218_v10 = vmax.f32 %v2202_v40, 0.0 }
 0x4c2   : > { %v2219_v38 = vmax.f32 %v2203_v50, 0.0  ;;  %v2179_v37 = vrot.slane %v2151_v62, %v4755_v14  ;;  %v2221_v57 = vmax.f32 %v2205_v17, 0.0  ;;  %v2271_v4 = vrot.slane %v2270_v41, 4 }
 0x4c3   : > { %v2232_v53 = vmax.f32 %v2230_v54, %v2231_v34  ;;  %v2238_v55 = vrot.slane %v2237_v51, 2  ;;  %v2245_v22 = vrot.slane %v2244_v52, 2  ;;  %v2278_v7 = vrot.slane %v2277_v35, 4 }
 0x4c4   : > { %3483 = vmatmul.mubr.f32.gmra.mrb[52].mxu0 %v2217_v25  ;;  %v2249_v56 = vmax.f32 %v2218_v10, %v2219_v38  ;;  %v2206_v3 = vadd.f32 %v2179_v37, %v5077_v47  ;;  %v2256_v6 = vmax.f32 %v2220_v18, %v2221_v57  ;;  %v2207_v1 = vadd.f32 %v5075_v46, %v2179_v37  ;;  %v2737_v37 = vld [vmem:[#allocation13 + $0x28] sm:$0xff] }
 0x4c5   : > { %v2233_v58 = vrot.slane %v2232_v53, 1  ;;  %v2239_v59 = vmax.f32 %v2237_v51, %v2238_v55  ;;  %v2246_v44 = vmax.f32 %v2244_v52, %v2245_v22  ;;  %3485 = vmatprep.mubr.f32.mxu0 %v2218_v10  ;;  %v2272_v13 = vmax.f32 %v2270_v41, %v2271_v4 }
 0x4c6   : > { %v2250_v5 = vrot.slane %v2249_v56, 4  ;;  %v2257_v23 = vrot.slane %v2256_v6, 4  ;;  %v2222_v49 = vmax.f32 %v2206_v3, 0.0  ;;  %v2279_v47 = vmax.f32 %v2277_v35, %v2278_v7  ;;  %v2741_v3 = vld [vmem:[#allocation13 + $0x48] sm:$0xff] }
 0x4c7   : > { %v2240_v9 = vrot.slane %v2239_v59, 1  ;;  %v2247_v19 = vrot.slane %v2246_v44, 1  ;;  %v2234_v8 = vmax.f32 %v2232_v53, %v2233_v58  ;;  %v2223_v12 = vmax.f32 %v2207_v1, 0.0  ;;  %v2739_v58 = vld [vmem:[#allocation13 + $0x38] sm:$0xff] }
 0x4c8   : > { %v2251_v63 = vmax.f32 %v2249_v56, %v2250_v5  ;;  %3486 = vmatmul.mubr.f32.gmra.mrb[54].mxu0 %v2219_v38  ;;  %v2258_v20 = vmax.f32 %v2256_v6, %v2257_v23  ;;  %v2273_v33 = vrot.slane %v2272_v13, 2  ;;  %v2280_v39 = vrot.slane %v2279_v47, 2  ;;  %v2742_v5 = vld [vmem:[#allocation13 + $0x50] sm:$0xff]  ;;  %v2743_v6 = vld [vmem:[#allocation13 + $0x58] sm:$0xff] }
 0x4c9   : > { %v2241_v62 = vmax.f32 %v2239_v59, %v2240_v9  ;;  %v2248_v60 = vmax.f32 %v2246_v44, %v2247_v19  ;;  %3488 = vmatprep.mubr.f32.mxu0 %v2220_v18  ;;  %v2263_v29 = vmax.f32 %v2222_v49, %v2223_v12  ;;  %v2740_v44 = vld [vmem:[#allocation13 + $0x40] sm:$0xff]  ;;  %v3786_v7 = vpack.c.bf16 %v2743_v6, %v2742_v5  ;;  %v2745_v19 = vld [vmem:[#allocation13 + $0x68] sm:$0xff]  ;;  %v2747_v23 = vld [vmem:[#allocation13 + $0x78] sm:$0xff] }
 0x4ca   : > { %v2252_v15 = vrot.slane %v2251_v63, 2  ;;  %v2259_v0 = vrot.slane %v2258_v20, 2  ;;  %v2274_v48 = vmax.f32 %v2272_v13, %v2273_v33  ;;  %v2281_v50 = vmax.f32 %v2279_v47, %v2280_v39  ;;  %v2744_v9 = vld [vmem:[#allocation13 + $0x60] sm:$0xff] }
 0x4cb   : > { %v2476_v36 = vsel %vm1573_vm0, %v2241_v62, %v2234_v8  ;;  %v2264_v54 = vrot.slane %v2263_v29, 4  ;;  %v3783_v4 = vpack.c.bf16 %v2741_v3, %v2740_v44  ;;  %v3789_v8 = vpack.c.bf16 %v2745_v19, %v2744_v9 }
 0x4cc   : > { %v2253_v42 = vmax.f32 %v2251_v63, %v2252_v15  ;;  %3489 = vmatmul.mubr.f32.gmra.mrb[56].mxu0 %v2221_v57  ;;  %v2477_v25 = vsel %vm1575_vm1, %v2248_v60, %v2476_v36  ;;  %v2260_v31 = vmax.f32 %v2258_v20, %v2259_v0  ;;  %v2275_v10 = vrot.slane %v2274_v48, 1  ;;  %v2738_v57 = vld [vmem:[#allocation13 + $0x30] sm:$0xff] }
 0x4cd   : > { %3491 = vmatprep.mubr.f32.mxu0 %v2222_v49  ;;  %v2265_v26 = vmax.f32 %v2263_v29, %v2264_v54  ;;  %v2282_v38 = vrot.slane %v2281_v50, 1  ;;  %v3780_v59 = vpack.c.bf16 %v2739_v58, %v2738_v57  ;;  %v2746_v63 = vld [vmem:[#allocation13 + $0x70] sm:$0xff] }
 0x4ce   : > { %v2254_v30 = vrot.slane %v2253_v42, 1  ;;  %v2261_v41 = vrot.slane %v2260_v31, 1  ;;  %v3792_v62 = vpack.c.bf16 %v2747_v23, %v2746_v63 }
 0x4cf   : > { %v2266_v34 = vrot.slane %v2265_v26, 2  ;;  %v2283_v17 = vmax.f32 %v2281_v50, %v2282_v38 }
 0x4d0   : > { %v2255_v46 = vmax.f32 %v2253_v42, %v2254_v30  ;;  %3492 = vmatmul.mubr.f32.gmra.mrb[58].mxu0 %v2223_v12  ;;  %v2262_v40 = vmax.f32 %v2260_v31, %v2261_v41  ;;  %v3011_v31 = vld [vmem:[%s5290_s17] ss:$0 sm:$0xff]  ;;  %s4150_s17 = sshll.u32 %s4242_s25, 4  ;;  %s4151_s17 = int_to_ptr.vmem [resolvable:$false] %s4150_s17 }
 0x4d1   : > { %3494 = vmatprep.mubr.f32.mxu0 %v2224_v27  ;;  %v2267_v52 = vmax.f32 %v2265_v26, %v2266_v34  ;;  %v2276_v27 = vmax.f32 %v2274_v48, %v2275_v10  ;;  %s4152_s16 = scalar_lea.vmem %s4151_s17, 256  ;;  %p4153_p5 = scmp.lt.s32.totalorder %s5191_s19, %s4151_s17 }
 0x4d2   : > { %v2478_v35 = vsel %vm1577_vm2, %v2255_v46, %v2477_v25  ;;  %p4154_p0 = scmp.lt.s32.totalorder %s4152_s16, %s4146_s13 }
 0x4d3   : > { %v2479_v51 = vsel %vm1579_vm3, %v2262_v40, %v2478_v35  ;;  %v2268_v18 = vrot.slane %v2267_v52, 1 }
 0x4d4   : > { %3495 = vmatmul.mubr.f32.gmra.mrb[60].mxu0 %v2225_v24  ;;  %p4155_p10 = por %p4154_p0, %p4153_p5 }
 0x4d5   : > { %3497 = vmatprep.mubr.f32.mxu0 %v2226_v32  ;;  %v2269_v61 = vmax.f32 %v2267_v52, %v2268_v18  ;;  %v2733_v32 = vld [vmem:[#allocation13 + $0x8] sm:$0xff] }
 0x4d6   : > { %v3771_v55 = vpack.c.bf16 %v2733_v32, %v2732_v2  ;;  %p4156_p2 = pnand %p4155_p10, %p4149_p9 }
 0x4d7   : > { %v2480_v53 = vsel %vm1581_vm4, %v2269_v61, %v2479_v51 }
 0x4d8   : > { %3498 = vmatmul.mubr.f32.gmra.mrb[62].mxu0 %v2227_v43  ;;  %v2481_v21 = vsel %vm1583_vm5, %v2276_v27, %v2480_v53  ;;  %v2735_v43 = vld [vmem:[#allocation13 + $0x18] sm:$0xff] }
 0x4d9   : > { %3567 = vmatprep.mubr.msk.f32.mxu0 %vm4239_vm6, %v4240_v11  ;;  %v2482_v24 = vsel %vm1585_vm7, %v2283_v17, %v2481_v21  ;;  %3772 = vmatpush3.bf16.msra.mxu0 %v3771_v55  ;;  %v3774_v22 = vpack.c.bf16 %v2735_v43, %v2734_v28  ;;  %v2736_v11 = vld [vmem:[#allocation13 + $0x20] sm:$0xff] }
 0x4da   : > { %3533 = vmatmul.mubr.f32.vlgmr.msra.gmra.mrb[20].mxu1 %v2482_v24  ;;  %3773 = vmatprep.subr.bf16.mxu0 %v4238_v16  ;;  %v3777_v56 = vpack.c.bf16 %v2737_v37, %v2736_v11 }
 0x4dd   : > { %3775 = vmatpush3.bf16.msra.mxu0 %v3774_v22 }
 0x4de   : > { %3776 = vmatprep.subr.bf16.mxu0 %v4238_v16 }
 0x4e1   : > { %3778 = vmatpush3.bf16.msra.mxu0 %v3777_v56 }
 0x4e2   : > { %3779 = vmatprep.subr.bf16.mxu0 %v4238_v16 }
 0x4e5   : > { %3781 = vmatpush3.bf16.msra.mxu0 %v3780_v59 }
 0x4e6   : > { %3782 = vmatprep.subr.bf16.mxu0 %v4238_v16 }
 0x4e9   : > { %3784 = vmatpush3.bf16.msra.mxu0 %v3783_v4 }
 0x4ea   : > { %3785 = vmatprep.subr.bf16.mxu0 %v4238_v16 }
 0x4ed   : > { %3787 = vmatpush3.bf16.msra.mxu0 %v3786_v7 }
 0x4ee   : > { %3788 = vmatprep.subr.bf16.mxu0 %v4238_v16 }
 0x4f1   : > { %3790 = vmatpush3.bf16.msra.mxu0 %v3789_v8 }
 0x4f2   : > { %3791 = vmatprep.subr.bf16.mxu0 %v4238_v16 }
 0x4f5   : > { %3793 = vmatpush3.bf16.msra.mxu0 %v3792_v62 }
 0x58f   : > { %v3478_v60 = vpop.f32.mrb[48].mxu0 }
 0x590   : > { %v2366_v49 = vpop.f32.mrb[49].mxu0 }
 0x593   : > { %v3481_v1 = vpop.f32.mrb[50].mxu0 }
 0x594   : > { %v2376_v13 = vpop.f32.mrb[51].mxu0 }
 0x597   : > { %v3484_v15 = vpop.f32.mrb[52].mxu0 }
 0x598   : > { %v2386_v20 = vpop.f32.mrb[53].mxu0 }
 0x59b   : > { %v3487_v47 = vpop.f32.mrb[54].mxu0 }
 0x59c   : > { %v2396_v36 = vpop.f32.mrb[55].mxu0 }
 0x59f   : > { %v3490_v12 = vpop.f32.mrb[56].mxu0 }
 0x5a0   : > { %v2406_v42 = vpop.f32.mrb[57].mxu0 }
 0x5a3   : > { %v5145_v0 = vpop.f32.mrb[58].mxu0 }
 0x5a4   : > { %v5147_v25 = vpop.f32.mrb[59].mxu0 }
 0x5a7   : > { %v3496_v29 = vpop.f32.mrb[60].mxu0 }
 0x5a8   : > { %v2426_v16 = vpop.f32.mrb[61].mxu0 }
 0x5ab   : > { %v5149_v33 = vpop.f32.mrb[62].mxu0 }
 0x5ac   : > { %v5151_v30 = vpop.f32.mrb[63].mxu0 }
 0x5ad   : > { %v2550_v39 = vpop.f32.mrb[20].mxu1 }
 0x5ae   : > { %v2551_v54 = vadd.f32 %v3011_v31, %v2550_v39  ;;  %v3534_v46 = vpop.f32.mrb[21].mxu1 }
 0x5b0   : > { %v2555_v41 = vcombine.high %v2551_v54, %v2551_v54  ;;  %v2562_v26 = vrot.slane %v2551_v54, %v5006_v45 }
 0x5b2   : > { %v2569_v48 = vrot.slane %v2555_v41, %v5006_v45  ;;  %v2570_v40 = vcombine.high %v2562_v26, %v2562_v26  ;;  %v2578_v35 = vrot.slane %v2562_v26, %v5006_v45 }
 0x5b4   : > { %v2571_v50 = vcombine.high %v2569_v48, %v2569_v48  ;;  %v2592_v34 = vrot.slane %v2570_v40, %v5006_v45  ;;  %v2600_v51 = vcombine.high %v2578_v35, %v2578_v35  ;;  %v2607_v52 = vrot.slane %v2578_v35, %v4755_v14 }
 0x5b5   : > { %v2585_v10 = vrot.slane %v2569_v48, %v5006_v45 }
 0x5b6   : > { %v2602_v38 = vcombine.high %v2592_v34, %v2592_v34  ;;  %v2611_v18 = vrot.slane %v2592_v34, %v4755_v14  ;;  %v2615_v61 = vrot.slane %v2600_v51, %v4755_v14  ;;  %v2644_v27 = vadd.f32 %v2607_v52, %v2366_v49 }
 0x5b7   : > { %v2645_v17 = vadd.f32 %v3478_v60, %v2607_v52  ;;  %v2601_v53 = vcombine.high %v2585_v10, %v2585_v10  ;;  %v2623_v21 = vrot.slane %v2585_v10, %v4755_v14  ;;  %v2599_v24 = vrot.slane %v2571_v50, %v5006_v45 }
 0x5b8   : > { %v2619_v2 = vrot.slane %v2602_v38, %v4755_v14  ;;  %v2646_v32 = vadd.f32 %v2611_v18, %v2376_v13  ;;  %v2647_v55 = vadd.f32 %v3481_v1, %v2611_v18  ;;  %v2648_v28 = vadd.f32 %v2615_v61, %v2386_v20 }
 0x5b9   : > { %v2649_v43 = vadd.f32 %v3484_v15, %v2615_v61  ;;  %v2660_v22 = vmax.f32 %v2644_v27, 0.0  ;;  %v2661_v11 = vmax.f32 %v2645_v17, 0.0  ;;  %v2631_v37 = vrot.slane %v2601_v53, %v4755_v14 }
 0x5ba   : > { %v2650_v56 = vadd.f32 %v2619_v2, %v2396_v36  ;;  %v2651_v57 = vadd.f32 %v3487_v47, %v2619_v2  ;;  %v2662_v58 = vmax.f32 %v2646_v32, 0.0  ;;  %v2663_v59 = vmax.f32 %v2647_v55, 0.0 }
 0x5bb   : > { %v2664_v44 = vmax.f32 %v2648_v28, 0.0  ;;  %v2665_v3 = vmax.f32 %v2649_v43, 0.0  ;;  %v2676_v4 = vmax.f32 %v2660_v22, %v2661_v11  ;;  %v2652_v5 = vadd.f32 %v2623_v21, %v2406_v42 }
 0x5bc   : > { %v2666_v6 = vmax.f32 %v2650_v56, 0.0  ;;  %v2667_v45 = vmax.f32 %v2651_v57, 0.0  ;;  %v2683_v7 = vmax.f32 %v2662_v58, %v2663_v59  ;;  %v2653_v9 = vadd.f32 %v3490_v12, %v2623_v21 }
 0x5bd   : > { %v2677_v19 = vrot.slane %v2676_v4, 4  ;;  %v2690_v8 = vmax.f32 %v2664_v44, %v2665_v3  ;;  %v2657_v63 = vadd.f32 %v3496_v29, %v2631_v37  ;;  %v2668_v23 = vmax.f32 %v2652_v5, 0.0 }
 0x5be   : > { %v2684_v62 = vrot.slane %v2683_v7, 4  ;;  %v2697_v60 = vmax.f32 %v2666_v6, %v2667_v45  ;;  %v2669_v49 = vmax.f32 %v2653_v9, 0.0  ;;  %v2656_v1 = vadd.f32 %v2631_v37, %v2426_v16 }
 0x5bf   : > { %v2678_v13 = vmax.f32 %v2676_v4, %v2677_v19  ;;  %v2691_v15 = vrot.slane %v2690_v8, 4  ;;  %v2673_v20 = vmax.f32 %v2657_v63, 0.0  ;;  %v2603_v47 = vcombine.high %v2599_v24, %v2599_v24 }
 0x5c0   : > { %v2685_v36 = vmax.f32 %v2683_v7, %v2684_v62  ;;  %v2698_v31 = vrot.slane %v2697_v60, 4  ;;  %v2704_v39 = vmax.f32 %v2668_v23, %v2669_v49  ;;  %v2672_v42 = vmax.f32 %v2656_v1, 0.0 }
 0x5c1   : > { %v2679_v54 = vrot.slane %v2678_v13, 2  ;;  %v2692_v46 = vmax.f32 %v2690_v8, %v2691_v15  ;;  %v2627_v12 = vrot.slane %v2599_v24, %v4755_v14  ;;  %v2635_v41 = vrot.slane %v2603_v47, %v4755_v14 }
 0x5c2   : > { %v2686_v29 = vrot.slane %v2685_v36, 2  ;;  %v2699_v26 = vmax.f32 %v2697_v60, %v2698_v31  ;;  %v2705_v48 = vrot.slane %v2704_v39, 4  ;;  %v2718_v40 = vmax.f32 %v2672_v42, %v2673_v20 }
 0x5c3   : > { %v2680_v35 = vmax.f32 %v2678_v13, %v2679_v54  ;;  %v2693_v16 = vrot.slane %v2692_v46, 2  ;;  %v2654_v50 = vadd.f32 %v2627_v12, %v5147_v25  ;;  %v2655_v34 = vadd.f32 %v5145_v0, %v2627_v12 }
 0x5c4   : > { %v2687_v51 = vmax.f32 %v2685_v36, %v2686_v29  ;;  %v2700_v52 = vrot.slane %v2699_v26, 2  ;;  %v2706_v10 = vmax.f32 %v2704_v39, %v2705_v48  ;;  %v2719_v38 = vrot.slane %v2718_v40, 4  ;;  %v3012_v39 = vld [vmem:[%s5293_s23] ss:$0 sm:$0xff] }
 0x5c5   : > { %v2681_v18 = vrot.slane %v2680_v35, 1  ;;  %v2694_v61 = vmax.f32 %v2692_v46, %v2693_v16  ;;  %v2659_v27 = vadd.f32 %v5149_v33, %v2635_v41  ;;  %v2670_v17 = vmax.f32 %v2654_v50, 0.0 }
 0x5c6   : > { %v2688_v14 = vrot.slane %v2687_v51, 1  ;;  %v2701_v53 = vmax.f32 %v2699_v26, %v2700_v52  ;;  %v2707_v21 = vrot.slane %v2706_v10, 2  ;;  %v2720_v24 = vmax.f32 %v2718_v40, %v2719_v38 }
 0x5c7   : > { %v2695_v2 = vrot.slane %v2694_v61, 1  ;;  %v2671_v32 = vmax.f32 %v2655_v34, 0.0  ;;  %v2682_v55 = vmax.f32 %v2680_v35, %v2681_v18  ;;  %v2675_v22 = vmax.f32 %v2659_v27, 0.0 }
 0x5c8   : > { %v2689_v28 = vmax.f32 %v2687_v51, %v2688_v14  ;;  %v2702_v25 = vrot.slane %v2701_v53, 1  ;;  %v2708_v43 = vmax.f32 %v2706_v10, %v2707_v21  ;;  %v2658_v37 = vadd.f32 %v2635_v41, %v5151_v30 }
 0x5c9   : > { %v2696_v0 = vmax.f32 %v2694_v61, %v2695_v2  ;;  %v2711_v11 = vmax.f32 %v2670_v17, %v2671_v32  ;;  %v2721_v56 = vrot.slane %v2720_v24, 2 }
 0x5ca   : > { %v2703_v57 = vmax.f32 %v2701_v53, %v2702_v25  ;;  %v2709_v58 = vrot.slane %v2708_v43, 1  ;;  %v2763_v33 = vsel %vm1573_vm0, %v2689_v28, %v2682_v55  ;;  %v2674_v44 = vmax.f32 %v2658_v37, 0.0 }
 0x5cb   : > { %v2712_v59 = vrot.slane %v2711_v11, 4  ;;  %v2764_v3 = vsel %vm1575_vm1, %v2696_v0, %v2763_v33  ;;  %v2722_v7 = vmax.f32 %v2720_v24, %v2721_v56 }
 0x5cc   : > { %v2710_v4 = vmax.f32 %v2708_v43, %v2709_v58  ;;  %v2765_v5 = vsel %vm1577_vm2, %v2703_v57, %v2764_v3  ;;  %v2725_v45 = vmax.f32 %v2674_v44, %v2675_v22 }
 0x5cd   : > { %v2713_v6 = vmax.f32 %v2711_v11, %v2712_v59  ;;  %v2723_v23 = vrot.slane %v2722_v7, 1 }
 0x5ce   : > { %v2766_v9 = vsel %vm1579_vm3, %v2710_v4, %v2765_v5  ;;  %v2726_v30 = vrot.slane %v2725_v45, 4 }
 0x5cf   : > { %v2714_v19 = vrot.slane %v2713_v6, 2  ;;  %v2724_v13 = vmax.f32 %v2722_v7, %v2723_v23 }
 0x5d0   : > { %v2727_v8 = vmax.f32 %v2725_v45, %v2726_v30 }
 0x5d1   : > { %v2715_v63 = vmax.f32 %v2713_v6, %v2714_v19 }
 0x5d2   : > { %v2728_v62 = vrot.slane %v2727_v8, 2 }
 0x5d3   : > { %v2716_v60 = vrot.slane %v2715_v63, 1 }
 0x5d4   : > { %v2729_v49 = vmax.f32 %v2727_v8, %v2728_v62 }
 0x5d5   : > { %v2717_v1 = vmax.f32 %v2715_v63, %v2716_v60 }
 0x5d6   : > { %v2730_v15 = vrot.slane %v2729_v49, 1 }
 0x5d7   : > { %v2767_v20 = vsel %vm1581_vm4, %v2717_v1, %v2766_v9 }
 0x5d8   : > { %v2768_v47 = vsel %vm1583_vm5, %v2724_v13, %v2767_v20  ;;  %v2731_v36 = vmax.f32 %v2729_v49, %v2730_v15 }
 0x5da   : > { %v2769_v31 = vsel %vm1585_vm7, %v2731_v36, %v2768_v47 }
 0x5db   : > { %3568 = vmatmul.mubr.f32.vlgmr.msra.gmra.mrb[64].mxu0 %v2769_v31 }
 0x6ae   : > { %v2837_v42 = vpop.f32.mrb[64].mxu0 }
 0x6af   : > { %v2838_v54 = vadd.f32 %v3012_v39, %v2837_v42  ;;  %v3569_v46 = vpop.f32.mrb[65].mxu0 }
 0x6b1   : > { %2841 = vst [vmem:[%s619_s15] sm:$0xff] %v2838_v54 }
 0x6b2   : > { %4159 = shalt.err (!%p4156_p2)
}
 0x6b3   : > { %s4160_s18 = scalar_lea.hbm %s5189_s29, 128  ;;  %s4164_s21 = scalar_lea.hbm %s5295_s20, 256 }
 0x6b4   : > { %p4161_p3 = scmp.ne.s32.totalorder %s5189_s29, %s4160_s18  ;;  %p4165_p7 = scmp.lt.u32.totalorder %s5189_s29, %s5295_s20 }
 0x6b5   : > { %p4166_p8 = scmp.lt.u32.totalorder %s4164_s21, %s4160_s18  ;;  %p4168_p13 = scmp.lt.u32.totalorder %s4160_s18, %s5189_s29 }
 0x6b6   : > { %p4162_p4 = pnand %p4161_p3, %p5296_p1 }
 0x6b7   : > { %p4167_p11 = por %p4166_p8, %p4165_p7 }
 0x6b8   : > { %p4163_p12 = pneg %p4162_p4 }
 0x6b9   : > { %p4169_p6 = por %p4168_p13, %p4167_p11 }
 0x6bb   : > { %p4170_p9 = pnand %p4169_p6, %p4163_p12 }
 0x6bd   : > { %4173 = shalt.err (!%p4170_p9)
}
 0x6be   : > { %3822 = dma.vmem_to_hbm [thread:$0]  (%p5296_p1), %s5191_s19, 128, %s5189_s29, %s2843_s22  }
 0x6bf PF: > { %s5297_s15 = sld [smem:[#allocation23_spill]]  ;;  %s5298_s28 = sld [smem:[#allocation20_spill]] }
 0x6c0   : > { %s5299_s30 = sld [smem:[#allocation27_spill]] }
 0x6c5   : > { %p3864_p5 = scmp.ge.s32.totalorder %s5297_s15, 2  ;;  %s2868_s24 = sand.u32 1, %s5298_s28  }
 0x6c6   : > { %p5300_p0 = scmp.ne.s32.totalorder %s5299_s30, 0  ;;  %s2869_s13 = scalar_lea.sflag [#allocation4], %s2868_s24 }
 0x6c8   : > { %p3847_p10 = pnand %p3864_p5, %p5300_p0 }
 0x6ca   : > { %4207 = dma.done.wait (!%p3847_p10), %s2869_s13, 128  }
 0x6cb   : > { %4209 = vsyncadd (!%p3847_p10), %s2869_s13, 4294967168  ;;  %s5301_s24 = sld [smem:[#allocation24_spill]]  ;;  %s5302_s21 = sld [smem:[#allocation21_spill]] }
 0x6cc   : > { %s5303_s22 = sld [smem:[#allocation22_spill]]  ;;  %s5304_s23 = sld [smem:[#allocation25_spill]] }
 0x6d1   : > { %p30_p2 = scmp.ge.s32.totalorder %s5301_s24, 4  }
 0x6d3   :  { %32 = sbr.rel (!%p30_p2) target bundleno = 13 (0xd), region = 150 }
 0x6da   :  { %2874 = vsyncpa [#allocation3], 1 }
 0x6db   :  { %2876 = vsyncpa [#allocation3 + $0x1], 1 }
 0x6dc   :  { %2877 = vsyncpa [#allocation6], 1 }
 0x6dd   :  { %2878 = vsyncpa [#allocation9], 1 }
 0x6de   :  { %2879 = vsyncpa [#allocation12], 1 }
 0x6df   :  { %2880 = vsyncpa [#allocation4], 1 }
 0x6e0   :  { %2882 = vsyncpa [#allocation4 + $0x1], 1 }

</bundles_post_ra>
